<compile_context>
chip_gen: v7x
topology: tpu7x:2x2x1
jax: 0.10.0
libtpu: 0.0.40
codegen_flags: <defaults>
</compile_context>

<pallas_src>
import jax
import jax.numpy as jnp
from jax.experimental import pallas as pl
from jax.experimental.pallas import tpu as pltpu


# ------------------------------ device heuristics ------------------------------

def _device_kind():
    try:
        return jax.devices()[0].device_kind.lower()
    except Exception:
        return ""


def _tensorcores_per_chip():
    k = _device_kind()
    return 2 if ("v7" in k or "7x" in k) else 1


def _tap_dtype():
    # bf16 elementwise / XLU only pays on v6e / v7x; v5e's VPU has no native bf16
    # elementwise, so keep the im2col build in f32 there.
    k = _device_kind()
    return jnp.bfloat16 if ("v6" in k or "v7" in k or "7x" in k) else jnp.float32


# ------------------------------- kernel helpers --------------------------------

def _edge_masks(H, W, M):
    """Precompute the 9 per-tap validity masks, shape (1, M) bool (None = no mask).

    Computed ONCE per kernel invocation and reused by all four 3x3 convs.
    Uses shift/and instead of div/mod when H, W are powers of two."""
    pos = jax.lax.broadcasted_iota(jnp.int32, (1, M), 1)
    if W & (W - 1) == 0:
        w_idx = pos & (W - 1)
        h_pos = pos >> (W.bit_length() - 1)
    else:
        w_idx = pos % W
        h_pos = pos // W
    h_idx = (h_pos & (H - 1)) if H & (H - 1) == 0 else (h_pos % H)

    top, bot = h_idx >= 1, h_idx <= H - 2
    left, right = w_idx >= 1, w_idx <= W - 2

    masks = []
    for dh in (-1, 0, 1):
        for dw in (-1, 0, 1):
            conds = []
            if dh == -1:
                conds.append(top)
            elif dh == 1:
                conds.append(bot)
            if dw == -1:
                conds.append(left)
            elif dw == 1:
                conds.append(right)
            m = None
            for c in conds:
                m = c if m is None else jnp.logical_and(m, c)
            masks.append(m)
    return masks


def _conv3x3(x_cm, w_ref, b_ref, masks, W, tap_dtype):
    """3x3 SAME conv on a channels-on-sublanes slab.

    x_cm  : (C, M) activation, pixels flattened row-major over (image, h, w).
    w_ref : (Cout, 9*C) bf16 weights (tap-major columns matching the sublane
            stacking order of the im2col slab).
    b_ref : (Cout, 1) f32 bias.
    Returns (Cout, M) f32.
    """
    C, M = x_cm.shape
    x_t = x_cm.astype(tap_dtype)
    taps = []
    k = 0
    for dh in (-1, 0, 1):
        for dw in (-1, 0, 1):
            shift = (-(dh * W + dw)) % M        # result[:, m] = x[:, m + dh*W + dw]
            t = pltpu.roll(x_t, shift, axis=1) if shift else x_t
            if masks[k] is not None:
                t = jnp.where(masks[k], t, 0.0)
            taps.append(t)
            k += 1
    slab = jnp.concatenate(taps, axis=0).astype(jnp.bfloat16)          # (9C, M)
    out = jnp.dot(w_ref[...], slab, preferred_element_type=jnp.float32)
    return out + b_ref[...]                                            # (Cout, M)


# ------------------------------- Pallas kernel ----------------------------------

def _make_refine1_kernel(H, W, NB, tap_dtype):
    HW = H * W
    inv_hw = 1.0 / HW

    def kernel(x_ref,                    # (1, C, M) input block (channels on sublanes)
               w1, b1,                   # conv_in            (C, 9C) bf16 / (C, 1) f32
               w2, b2,                   # CA process conv 0  (+ReLU)
               w3, b3,                   # CA process conv 1
               wd1, bd1,                 # CA conv_du squeeze (C//4, C) f32
               wd2, bd2,                 # CA conv_du excite  (C, C//4) f32
               wl, bl,                   # conv_last          (Cout, 9C) bf16
               o_ref,                    # (1, Cout, M) lane-dense output
               t0_ref):                  # VMEM scratch (C, M) tap_dtype : residual
        C, M = x_ref.shape[1], x_ref.shape[2]

        # Hoisted once: edge masks shared by all four 3x3 convs.
        masks = _edge_masks(H, W, M)

        # conv_in -- stash the residual in VMEM scratch.
        t0 = _conv3x3(x_ref[0], w1, b1, masks, W, tap_dtype)           # (C, M) f32
        t0_ref[...] = t0.astype(t0_ref.dtype)

        # CALayer.process : conv3x3 -> ReLU -> conv3x3
        t1 = jnp.maximum(_conv3x3(t0_ref[...], w2, b2, masks, W, tap_dtype), 0.0)
        t2 = _conv3x3(t1, w3, b3, masks, W, tap_dtype)                 # (C, M) f32

        # CALayer.avg_pool : per-image global mean -> (C, NB) f32.
        # Tile-aligned lane slices + XLU lane reductions (no layout-crossing reshape).
        if NB == 1:
            y = jnp.sum(t2, axis=1, keepdims=True) * inv_hw            # (C, 1)
        else:
            y = jnp.concatenate(
                [jnp.sum(t2[:, i * HW:(i + 1) * HW], axis=1, keepdims=True)
                 for i in range(NB)], axis=1) * inv_hw                 # (C, NB)

        # CALayer.conv_du : 1x1 squeeze -> ReLU -> 1x1 excite -> sigmoid (tiny, f32).
        # TODO(synk): could move off the MXU (VPU broadcast-mult + reduce); kept as
        # two tiny dots for lowering robustness.
        h = jnp.maximum(
            jnp.dot(wd1[...], y, preferred_element_type=jnp.float32) + bd1[...], 0.0)
        z = jax.nn.sigmoid(
            jnp.dot(wd2[...], h, preferred_element_type=jnp.float32) + bd2[...])

        # CALayer output = z * y + input : gated pooled vector broadcast per image.
        gate = (z * y).astype(t0_ref.dtype)                            # (C, NB)
        if NB == 1:
            ca = t0_ref[...] + gate                                    # lane broadcast
        else:
            gate_map = jnp.concatenate(
                [jnp.broadcast_to(gate[:, i:i + 1], (C, HW)) for i in range(NB)],
                axis=1)                                                # (C, M)
            ca = t0_ref[...] + gate_map

        # conv_last; (Cout, M) stores lane-dense, no in-kernel relayout.
        out = _conv3x3(ca, wl, bl, masks, W, tap_dtype)
        o_ref[0] = out.astype(o_ref.dtype)

    return kernel


# ---------------------------------- wrapper -------------------------------------

_VMEM_BUDGET_BYTES = 24 * 1024 * 1024     # live-set budget per grid step
_VMEM_LIMIT_BYTES = 48 * 1024 * 1024      # scoped VMEM limit (fits v7x's 64 MiB/TC)


def _auto_images_per_block(batch, HW, C):
    # Rough per-image live set: bf16 9C im2col slab + a few (C, M) slabs.
    per_image = HW * C * 40
    if _tensorcores_per_chip() >= 2 and batch > 1:
        return 1            # one image per grid step, "parallel" across TensorCores
    nb = max(1, min(batch, _VMEM_BUDGET_BYTES // max(per_image, 1)))
    while batch % nb:
        nb -= 1
    return nb


def pack_refine1_params(p):
    """All weight relayout / casting happens in the wrapper, not the kernel.

    3x3 HWIO weights -> (Cout, 9*Cin) bf16 (columns ordered (kh, kw, cin), matching
    the im2col sublane stacking); biases -> (Cout, 1) f32; 1x1 conv_du weights stay
    f32 and are transposed so the kernel computes W @ y on (C, NB) pooled vectors."""
    def w3x3(w):
        w = jnp.asarray(w)                                           # (3,3,Cin,Cout)
        return w.reshape(-1, w.shape[-1]).T.astype(jnp.bfloat16)     # (Cout, 9*Cin)

    def bias_col(b):
        return jnp.asarray(b, jnp.float32).reshape(-1, 1)            # (Cout, 1)

    return (w3x3(p["w1"]), bias_col(p["b1"]),
            w3x3(p["w2"]), bias_col(p["b2"]),
            w3x3(p["w3"]), bias_col(p["b3"]),
            jnp.asarray(p["wd1"], jnp.float32).T, bias_col(p["bd1"]),   # (C//4, C)
            jnp.asarray(p["wd2"], jnp.float32).T, bias_col(p["bd2"]),   # (C, C//4)
            w3x3(p["wl"]), bias_col(p["bl"]))


def refine1_pallas(x, packed_params, *, images_per_block=None):
    """x: (B, H, W, n_feat) NHWC.  Returns (B, H, W, out_ch)."""
    B, H, W, C = x.shape
    out_dtype = x.dtype
    Cout = packed_params[10].shape[0]

    HW = H * W
    NB = (_auto_images_per_block(B, HW, C) if images_per_block is None
          else images_per_block)
    assert B % NB == 0, (B, NB)
    nblk = B // NB
    M = NB * HW

    tap_dtype = _tap_dtype()

    # Channels-on-sublanes / pixels-on-lanes layout, pre-cast to the elementwise
    # dtype (bf16 on v6e/v7x halves the input DMA).  Transpose runs in HBM via XLA.
    x_cm = (x.astype(tap_dtype)
             .reshape(nblk, NB, HW, C)
             .transpose(0, 3, 1, 2)
             .reshape(nblk, C, M))

    def const_spec(a):
        return pl.BlockSpec(a.shape, lambda i, _nd=a.ndim: (0,) * _nd)

    grid_spec = pltpu.PrefetchScalarGridSpec(
        num_scalar_prefetch=0,
        grid=(nblk,),
        in_specs=[pl.BlockSpec((1, C, M), lambda i: (i, 0, 0))]
                 + [const_spec(a) for a in packed_params],
        out_specs=pl.BlockSpec((1, Cout, M), lambda i: (i, 0, 0)),
        scratch_shapes=[pltpu.VMEM((C, M), tap_dtype)],
    )
    out_cm = pl.pallas_call(
        _make_refine1_kernel(H, W, NB, tap_dtype),
        out_shape=jax.ShapeDtypeStruct((nblk, Cout, M), out_dtype),
        grid_spec=grid_spec,
        compiler_params=pltpu.CompilerParams(
            dimension_semantics=("parallel",),
            vmem_limit_bytes=_VMEM_LIMIT_BYTES),
    )(x_cm, *packed_params)

    # (nblk, Cout, NB*H*W) -> (B, H, W, Cout)   (HBM transpose in the wrapper)
    return (out_cm.reshape(nblk, Cout, NB, H, W)
                  .transpose(0, 2, 3, 4, 1)
                  .reshape(B, H, W, Cout))


# ----------------------------- pure-JAX reference --------------------------------

def _conv2d_ref(x, w_hwio, b):
    out = jax.lax.conv_general_dilated(
        x, w_hwio, window_strides=(1, 1), padding="SAME",
        dimension_numbers=("NHWC", "HWIO", "NHWC"))
    return out + b.reshape(1, 1, 1, -1)


def refine1_ref(x, p):
    t0 = _conv2d_ref(x, p["w1"], p["b1"])
    t1 = jax.nn.relu(_conv2d_ref(t0, p["w2"], p["b2"]))
    t2 = _conv2d_ref(t1, p["w3"], p["b3"])
    y = jnp.mean(t2, axis=(1, 2), keepdims=True)                       # (B,1,1,C)
    h = jax.nn.relu(jnp.einsum("bijc,cd->bijd", y, p["wd1"]) + p["bd1"])
    z = jax.nn.sigmoid(jnp.einsum("bijc,cd->bijd", h, p["wd2"]) + p["bd2"])
    ca = t0 + z * y                                  # CALayer: z*y + input (as in PyTorch)
    return _conv2d_ref(ca, p["wl"], p["bl"])


# -------------------------------------- main -------------------------------------

if __name__ == "__main__":
    # module config: Refine1(in_channels=7, panchannels=3, n_feat=16); NHWC activations
    B, H, W = 2, 16, 16
    n_feat = 16
    in_channels, panchannels = 7, 3
    out_ch = in_channels - panchannels          # conv_last output channels = 4
    red = n_feat // 4                           # CALayer reduction = 4

    key = jax.random.PRNGKey(0)
    keys = jax.random.split(key, 13)

    def conv_w(k, cin, cout):                   # HWIO
        return jax.random.normal(k, (3, 3, cin, cout), jnp.float32) * 0.1

    ref_params = {
        "w1": conv_w(keys[0], n_feat, n_feat),
        "b1": jax.random.normal(keys[1], (n_feat,), jnp.float32) * 0.01,
        "w2": conv_w(keys[2], n_feat, n_feat),
        "b2": jax.random.normal(keys[3], (n_feat,), jnp.float32) * 0.01,
        "w3": conv_w(keys[4], n_feat, n_feat),
        "b3": jax.random.normal(keys[5], (n_feat,), jnp.float32) * 0.01,
        "wd1": jax.random.normal(keys[6], (n_feat, red), jnp.float32) * 0.1,
        "bd1": jax.random.normal(keys[7], (red,), jnp.float32) * 0.01,
        "wd2": jax.random.normal(keys[8], (red, n_feat), jnp.float32) * 0.1,
        "bd2": jax.random.normal(keys[9], (n_feat,), jnp.float32) * 0.01,
        "wl": conv_w(keys[10], n_feat, out_ch),
        "bl": jax.random.normal(keys[11], (out_ch,), jnp.float32) * 0.01,
    }
    packed = pack_refine1_params(ref_params)

    # NHWC input (PyTorch module takes NCHW; x_nhwc = x_nchw.transpose(0, 2, 3, 1))
    x = jax.random.normal(keys[12], (B, H, W, n_feat), jnp.float32)

    expected = refine1_ref(x, ref_params)

    # Exercise both batching strategies (the public wrapper picks one automatically
    # from the chip's TensorCore count / VMEM budget).
    auto_nb = _auto_images_per_block(B, H * W, n_feat)
    for nb in sorted({1, B, auto_nb}):
        out = refine1_pallas(x, packed, images_per_block=nb)
        out = jax.block_until_ready(out)
        assert out.shape == (B, H, W, out_ch), out.shape
        # bf16 MXU operands (f32 accumulation) vs a pure-f32 reference.
        err = float(jnp.max(jnp.abs(out - expected)))
        assert jnp.allclose(out, expected, rtol=3e-2, atol=3e-2), \
            f"images_per_block={nb}: max abs diff {err}"

    print("KERNEL_OK")
</pallas_src>

<mosaic_0001>
module attributes {stable_mosaic.version = 11 : i64} {
  func.func @kernel(%arg0: i32, %arg1: memref<1x16x256xf32, #tpu.memory_space<vmem>>, %arg2: memref<16x144xbf16, #tpu.memory_space<vmem>>, %arg3: memref<16x1xf32, #tpu.memory_space<vmem>>, %arg4: memref<16x144xbf16, #tpu.memory_space<vmem>>, %arg5: memref<16x1xf32, #tpu.memory_space<vmem>>, %arg6: memref<16x144xbf16, #tpu.memory_space<vmem>>, %arg7: memref<16x1xf32, #tpu.memory_space<vmem>>, %arg8: memref<4x16xf32, #tpu.memory_space<vmem>>, %arg9: memref<4x1xf32, #tpu.memory_space<vmem>>, %arg10: memref<16x4xf32, #tpu.memory_space<vmem>>, %arg11: memref<16x1xf32, #tpu.memory_space<vmem>>, %arg12: memref<4x144xbf16, #tpu.memory_space<vmem>>, %arg13: memref<4x1xf32, #tpu.memory_space<vmem>>, %arg14: memref<1x4x256xf32, #tpu.memory_space<vmem>>, %arg15: memref<16x256xf32, #tpu.memory_space<vmem>>) attributes {dimension_semantics = [#tpu.dimension_semantics<parallel>], iteration_bounds = array<i64: 2>, scalar_prefetch = 0 : i64, scratch_operands = 1 : i64, tpu.core_type = #tpu.core_type<tc>, window_params = [{transform_indices = @transform_0, window_bounds = array<i64: 1, 16, 256>}, {pipeline_mode = #tpu.pipeline_mode<synchronous>, transform_indices = @transform_1, window_bounds = array<i64: 16, 144>}, {pipeline_mode = #tpu.pipeline_mode<synchronous>, transform_indices = @transform_2, window_bounds = array<i64: 16, 1>}, {pipeline_mode = #tpu.pipeline_mode<synchronous>, transform_indices = @transform_3, window_bounds = array<i64: 16, 144>}, {pipeline_mode = #tpu.pipeline_mode<synchronous>, transform_indices = @transform_4, window_bounds = array<i64: 16, 1>}, {pipeline_mode = #tpu.pipeline_mode<synchronous>, transform_indices = @transform_5, window_bounds = array<i64: 16, 144>}, {pipeline_mode = #tpu.pipeline_mode<synchronous>, transform_indices = @transform_6, window_bounds = array<i64: 16, 1>}, {pipeline_mode = #tpu.pipeline_mode<synchronous>, transform_indices = @transform_7, window_bounds = array<i64: 4, 16>}, {pipeline_mode = #tpu.pipeline_mode<synchronous>, transform_indices = @transform_8, window_bounds = array<i64: 4, 1>}, {pipeline_mode = #tpu.pipeline_mode<synchronous>, transform_indices = @transform_9, window_bounds = array<i64: 16, 4>}, {pipeline_mode = #tpu.pipeline_mode<synchronous>, transform_indices = @transform_10, window_bounds = array<i64: 16, 1>}, {pipeline_mode = #tpu.pipeline_mode<synchronous>, transform_indices = @transform_11, window_bounds = array<i64: 4, 144>}, {pipeline_mode = #tpu.pipeline_mode<synchronous>, transform_indices = @transform_12, window_bounds = array<i64: 4, 1>}, {transform_indices = @transform_13, window_bounds = array<i64: 1, 4, 256>}]} {
    %0 = tpu.iota {dimensions = array<i32: 1>} : vector<1x256xi32>
    %c15_i32 = arith.constant 15 : i32
    %1 = vector.broadcast %c15_i32 : i32 to vector<1x256xi32>
    %2 = arith.andi %0, %1 : vector<1x256xi32>
    %c4_i32 = arith.constant 4 : i32
    %3 = vector.broadcast %c4_i32 : i32 to vector<1x256xi32>
    %4 = arith.shrsi %0, %3 : vector<1x256xi32>
    %c15_i32_0 = arith.constant 15 : i32
    %5 = vector.broadcast %c15_i32_0 : i32 to vector<1x256xi32>
    %6 = arith.andi %4, %5 : vector<1x256xi32>
    %c1_i32 = arith.constant 1 : i32
    %7 = vector.broadcast %c1_i32 : i32 to vector<1x256xi32>
    %8 = arith.cmpi sge, %6, %7 : vector<1x256xi32>
    %c14_i32 = arith.constant 14 : i32
    %9 = vector.broadcast %c14_i32 : i32 to vector<1x256xi32>
    %10 = arith.cmpi sle, %6, %9 : vector<1x256xi32>
    %c1_i32_1 = arith.constant 1 : i32
    %11 = vector.broadcast %c1_i32_1 : i32 to vector<1x256xi32>
    %12 = arith.cmpi sge, %2, %11 : vector<1x256xi32>
    %c14_i32_2 = arith.constant 14 : i32
    %13 = vector.broadcast %c14_i32_2 : i32 to vector<1x256xi32>
    %14 = arith.cmpi sle, %2, %13 : vector<1x256xi32>
    %15 = arith.andi %8, %12 : vector<1x256xi1>
    %16 = arith.andi %8, %14 : vector<1x256xi1>
    %17 = arith.andi %10, %12 : vector<1x256xi1>
    %18 = arith.andi %10, %14 : vector<1x256xi1>
    %c0 = arith.constant 0 : index
    %c0_3 = arith.constant 0 : index
    %c0_4 = arith.constant 0 : index
    %19 = vector.load %arg1[%c0, %c0_3, %c0_4] : memref<1x16x256xf32, #tpu.memory_space<vmem>>, vector<1x16x256xf32>
    %20 = vector.shape_cast %19 : vector<1x16x256xf32> to vector<16x256xf32>
    %c17_i32 = arith.constant 17 : i32
    %21 = tpu.dynamic_rotate %20 by %c17_i32 dim 1 : vector<16x256xf32>, i32 -> vector<16x256xf32>
    %cst = arith.constant 0.000000e+00 : f32
    %22 = vector.shape_cast %15 : vector<1x256xi1> to vector<1x256xi1>
    %23 = vector.broadcast %22 : vector<1x256xi1> to vector<16x256xi1>
    %24 = vector.broadcast %cst : f32 to vector<16x256xf32>
    %25 = arith.select %23, %21, %24 : vector<16x256xi1>, vector<16x256xf32>
    %c16_i32 = arith.constant 16 : i32
    %26 = tpu.dynamic_rotate %20 by %c16_i32 dim 1 : vector<16x256xf32>, i32 -> vector<16x256xf32>
    %cst_5 = arith.constant 0.000000e+00 : f32
    %27 = vector.shape_cast %8 : vector<1x256xi1> to vector<1x256xi1>
    %28 = vector.broadcast %27 : vector<1x256xi1> to vector<16x256xi1>
    %29 = vector.broadcast %cst_5 : f32 to vector<16x256xf32>
    %30 = arith.select %28, %26, %29 : vector<16x256xi1>, vector<16x256xf32>
    %c15_i32_6 = arith.constant 15 : i32
    %31 = tpu.dynamic_rotate %20 by %c15_i32_6 dim 1 : vector<16x256xf32>, i32 -> vector<16x256xf32>
    %cst_7 = arith.constant 0.000000e+00 : f32
    %32 = vector.shape_cast %16 : vector<1x256xi1> to vector<1x256xi1>
    %33 = vector.broadcast %32 : vector<1x256xi1> to vector<16x256xi1>
    %34 = vector.broadcast %cst_7 : f32 to vector<16x256xf32>
    %35 = arith.select %33, %31, %34 : vector<16x256xi1>, vector<16x256xf32>
    %c1_i32_8 = arith.constant 1 : i32
    %36 = tpu.dynamic_rotate %20 by %c1_i32_8 dim 1 : vector<16x256xf32>, i32 -> vector<16x256xf32>
    %cst_9 = arith.constant 0.000000e+00 : f32
    %37 = vector.shape_cast %12 : vector<1x256xi1> to vector<1x256xi1>
    %38 = vector.broadcast %37 : vector<1x256xi1> to vector<16x256xi1>
    %39 = vector.broadcast %cst_9 : f32 to vector<16x256xf32>
    %40 = arith.select %38, %36, %39 : vector<16x256xi1>, vector<16x256xf32>
    %c255_i32 = arith.constant 255 : i32
    %41 = tpu.dynamic_rotate %20 by %c255_i32 dim 1 : vector<16x256xf32>, i32 -> vector<16x256xf32>
    %cst_10 = arith.constant 0.000000e+00 : f32
    %42 = vector.shape_cast %14 : vector<1x256xi1> to vector<1x256xi1>
    %43 = vector.broadcast %42 : vector<1x256xi1> to vector<16x256xi1>
    %44 = vector.broadcast %cst_10 : f32 to vector<16x256xf32>
    %45 = arith.select %43, %41, %44 : vector<16x256xi1>, vector<16x256xf32>
    %c241_i32 = arith.constant 241 : i32
    %46 = tpu.dynamic_rotate %20 by %c241_i32 dim 1 : vector<16x256xf32>, i32 -> vector<16x256xf32>
    %cst_11 = arith.constant 0.000000e+00 : f32
    %47 = vector.shape_cast %17 : vector<1x256xi1> to vector<1x256xi1>
    %48 = vector.broadcast %47 : vector<1x256xi1> to vector<16x256xi1>
    %49 = vector.broadcast %cst_11 : f32 to vector<16x256xf32>
    %50 = arith.select %48, %46, %49 : vector<16x256xi1>, vector<16x256xf32>
    %c240_i32 = arith.constant 240 : i32
    %51 = tpu.dynamic_rotate %20 by %c240_i32 dim 1 : vector<16x256xf32>, i32 -> vector<16x256xf32>
    %cst_12 = arith.constant 0.000000e+00 : f32
    %52 = vector.shape_cast %10 : vector<1x256xi1> to vector<1x256xi1>
    %53 = vector.broadcast %52 : vector<1x256xi1> to vector<16x256xi1>
    %54 = vector.broadcast %cst_12 : f32 to vector<16x256xf32>
    %55 = arith.select %53, %51, %54 : vector<16x256xi1>, vector<16x256xf32>
    %c239_i32 = arith.constant 239 : i32
    %56 = tpu.dynamic_rotate %20 by %c239_i32 dim 1 : vector<16x256xf32>, i32 -> vector<16x256xf32>
    %cst_13 = arith.constant 0.000000e+00 : f32
    %57 = vector.shape_cast %18 : vector<1x256xi1> to vector<1x256xi1>
    %58 = vector.broadcast %57 : vector<1x256xi1> to vector<16x256xi1>
    %59 = vector.broadcast %cst_13 : f32 to vector<16x256xf32>
    %60 = arith.select %58, %56, %59 : vector<16x256xi1>, vector<16x256xf32>
    %61 = tpu.concatenate %25, %30, %35, %40, %20, %45, %50, %55, %60 in 0 : vector<16x256xf32>, vector<16x256xf32>, vector<16x256xf32>, vector<16x256xf32>, vector<16x256xf32>, vector<16x256xf32>, vector<16x256xf32>, vector<16x256xf32>, vector<16x256xf32> -> vector<144x256xf32>
    %62 = arith.truncf %61 : vector<144x256xf32> to vector<144x256xbf16>
    %c0_14 = arith.constant 0 : index
    %c0_15 = arith.constant 0 : index
    %63 = vector.load %arg2[%c0_14, %c0_15] : memref<16x144xbf16, #tpu.memory_space<vmem>>, vector<16x144xbf16>
    %cst_16 = arith.constant dense<0.000000e+00> : vector<16x256xf32>
    %64 = tpu.matmul %63, %62, %cst_16 {dimension_numbers = #tpu.dot_dimension_numbers<[1], [0], [0], [1], [0, 0, 1, 1], [], []>} : vector<16x144xbf16>, vector<144x256xbf16>, vector<16x256xf32> -> vector<16x256xf32>
    %c0_17 = arith.constant 0 : index
    %c0_18 = arith.constant 0 : index
    %65 = vector.load %arg3[%c0_17, %c0_18] : memref<16x1xf32, #tpu.memory_space<vmem>>, vector<16x1xf32>
    %66 = vector.broadcast %65 : vector<16x1xf32> to vector<16x256xf32>
    %67 = arith.addf %64, %66 : vector<16x256xf32>
    %c0_19 = arith.constant 0 : index
    %c0_20 = arith.constant 0 : index
    %68 = vector.load %arg15[%c0_19, %c0_20] : memref<16x256xf32, #tpu.memory_space<vmem>>, vector<16x256xf32>
    tpu.vector_store %arg15[%c0_19, %c0_20], %67 {strides = array<i32>} : memref<16x256xf32, #tpu.memory_space<vmem>>, vector<16x256xf32>,
    %c0_21 = arith.constant 0 : index
    %c0_22 = arith.constant 0 : index
    %69 = vector.load %arg15[%c0_21, %c0_22] : memref<16x256xf32, #tpu.memory_space<vmem>>, vector<16x256xf32>
    %c17_i32_23 = arith.constant 17 : i32
    %70 = tpu.dynamic_rotate %69 by %c17_i32_23 dim 1 : vector<16x256xf32>, i32 -> vector<16x256xf32>
    %cst_24 = arith.constant 0.000000e+00 : f32
    %71 = vector.shape_cast %15 : vector<1x256xi1> to vector<1x256xi1>
    %72 = vector.broadcast %71 : vector<1x256xi1> to vector<16x256xi1>
    %73 = vector.broadcast %cst_24 : f32 to vector<16x256xf32>
    %74 = arith.select %72, %70, %73 : vector<16x256xi1>, vector<16x256xf32>
    %c16_i32_25 = arith.constant 16 : i32
    %75 = tpu.dynamic_rotate %69 by %c16_i32_25 dim 1 : vector<16x256xf32>, i32 -> vector<16x256xf32>
    %cst_26 = arith.constant 0.000000e+00 : f32
    %76 = vector.shape_cast %8 : vector<1x256xi1> to vector<1x256xi1>
    %77 = vector.broadcast %76 : vector<1x256xi1> to vector<16x256xi1>
    %78 = vector.broadcast %cst_26 : f32 to vector<16x256xf32>
    %79 = arith.select %77, %75, %78 : vector<16x256xi1>, vector<16x256xf32>
    %c15_i32_27 = arith.constant 15 : i32
    %80 = tpu.dynamic_rotate %69 by %c15_i32_27 dim 1 : vector<16x256xf32>, i32 -> vector<16x256xf32>
    %cst_28 = arith.constant 0.000000e+00 : f32
    %81 = vector.shape_cast %16 : vector<1x256xi1> to vector<1x256xi1>
    %82 = vector.broadcast %81 : vector<1x256xi1> to vector<16x256xi1>
    %83 = vector.broadcast %cst_28 : f32 to vector<16x256xf32>
    %84 = arith.select %82, %80, %83 : vector<16x256xi1>, vector<16x256xf32>
    %c1_i32_29 = arith.constant 1 : i32
    %85 = tpu.dynamic_rotate %69 by %c1_i32_29 dim 1 : vector<16x256xf32>, i32 -> vector<16x256xf32>
    %cst_30 = arith.constant 0.000000e+00 : f32
    %86 = vector.shape_cast %12 : vector<1x256xi1> to vector<1x256xi1>
    %87 = vector.broadcast %86 : vector<1x256xi1> to vector<16x256xi1>
    %88 = vector.broadcast %cst_30 : f32 to vector<16x256xf32>
    %89 = arith.select %87, %85, %88 : vector<16x256xi1>, vector<16x256xf32>
    %c255_i32_31 = arith.constant 255 : i32
    %90 = tpu.dynamic_rotate %69 by %c255_i32_31 dim 1 : vector<16x256xf32>, i32 -> vector<16x256xf32>
    %cst_32 = arith.constant 0.000000e+00 : f32
    %91 = vector.shape_cast %14 : vector<1x256xi1> to vector<1x256xi1>
    %92 = vector.broadcast %91 : vector<1x256xi1> to vector<16x256xi1>
    %93 = vector.broadcast %cst_32 : f32 to vector<16x256xf32>
    %94 = arith.select %92, %90, %93 : vector<16x256xi1>, vector<16x256xf32>
    %c241_i32_33 = arith.constant 241 : i32
    %95 = tpu.dynamic_rotate %69 by %c241_i32_33 dim 1 : vector<16x256xf32>, i32 -> vector<16x256xf32>
    %cst_34 = arith.constant 0.000000e+00 : f32
    %96 = vector.shape_cast %17 : vector<1x256xi1> to vector<1x256xi1>
    %97 = vector.broadcast %96 : vector<1x256xi1> to vector<16x256xi1>
    %98 = vector.broadcast %cst_34 : f32 to vector<16x256xf32>
    %99 = arith.select %97, %95, %98 : vector<16x256xi1>, vector<16x256xf32>
    %c240_i32_35 = arith.constant 240 : i32
    %100 = tpu.dynamic_rotate %69 by %c240_i32_35 dim 1 : vector<16x256xf32>, i32 -> vector<16x256xf32>
    %cst_36 = arith.constant 0.000000e+00 : f32
    %101 = vector.shape_cast %10 : vector<1x256xi1> to vector<1x256xi1>
    %102 = vector.broadcast %101 : vector<1x256xi1> to vector<16x256xi1>
    %103 = vector.broadcast %cst_36 : f32 to vector<16x256xf32>
    %104 = arith.select %102, %100, %103 : vector<16x256xi1>, vector<16x256xf32>
    %c239_i32_37 = arith.constant 239 : i32
    %105 = tpu.dynamic_rotate %69 by %c239_i32_37 dim 1 : vector<16x256xf32>, i32 -> vector<16x256xf32>
    %cst_38 = arith.constant 0.000000e+00 : f32
    %106 = vector.shape_cast %18 : vector<1x256xi1> to vector<1x256xi1>
    %107 = vector.broadcast %106 : vector<1x256xi1> to vector<16x256xi1>
    %108 = vector.broadcast %cst_38 : f32 to vector<16x256xf32>
    %109 = arith.select %107, %105, %108 : vector<16x256xi1>, vector<16x256xf32>
    %110 = tpu.concatenate %74, %79, %84, %89, %69, %94, %99, %104, %109 in 0 : vector<16x256xf32>, vector<16x256xf32>, vector<16x256xf32>, vector<16x256xf32>, vector<16x256xf32>, vector<16x256xf32>, vector<16x256xf32>, vector<16x256xf32>, vector<16x256xf32> -> vector<144x256xf32>
    %111 = arith.truncf %110 : vector<144x256xf32> to vector<144x256xbf16>
    %c0_39 = arith.constant 0 : index
    %c0_40 = arith.constant 0 : index
    %112 = vector.load %arg4[%c0_39, %c0_40] : memref<16x144xbf16, #tpu.memory_space<vmem>>, vector<16x144xbf16>
    %cst_41 = arith.constant dense<0.000000e+00> : vector<16x256xf32>
    %113 = tpu.matmul %112, %111, %cst_41 {dimension_numbers = #tpu.dot_dimension_numbers<[1], [0], [0], [1], [0, 0, 1, 1], [], []>} : vector<16x144xbf16>, vector<144x256xbf16>, vector<16x256xf32> -> vector<16x256xf32>
    %c0_42 = arith.constant 0 : index
    %c0_43 = arith.constant 0 : index
    %114 = vector.load %arg5[%c0_42, %c0_43] : memref<16x1xf32, #tpu.memory_space<vmem>>, vector<16x1xf32>
    %115 = vector.broadcast %114 : vector<16x1xf32> to vector<16x256xf32>
    %116 = arith.addf %113, %115 : vector<16x256xf32>
    %cst_44 = arith.constant 0.000000e+00 : f32
    %117 = vector.broadcast %cst_44 : f32 to vector<16x256xf32>
    %118 = arith.maximumf %116, %117 : vector<16x256xf32>
    %c17_i32_45 = arith.constant 17 : i32
    %119 = tpu.dynamic_rotate %118 by %c17_i32_45 dim 1 : vector<16x256xf32>, i32 -> vector<16x256xf32>
    %cst_46 = arith.constant 0.000000e+00 : f32
    %120 = vector.shape_cast %15 : vector<1x256xi1> to vector<1x256xi1>
    %121 = vector.broadcast %120 : vector<1x256xi1> to vector<16x256xi1>
    %122 = vector.broadcast %cst_46 : f32 to vector<16x256xf32>
    %123 = arith.select %121, %119, %122 : vector<16x256xi1>, vector<16x256xf32>
    %c16_i32_47 = arith.constant 16 : i32
    %124 = tpu.dynamic_rotate %118 by %c16_i32_47 dim 1 : vector<16x256xf32>, i32 -> vector<16x256xf32>
    %cst_48 = arith.constant 0.000000e+00 : f32
    %125 = vector.shape_cast %8 : vector<1x256xi1> to vector<1x256xi1>
    %126 = vector.broadcast %125 : vector<1x256xi1> to vector<16x256xi1>
    %127 = vector.broadcast %cst_48 : f32 to vector<16x256xf32>
    %128 = arith.select %126, %124, %127 : vector<16x256xi1>, vector<16x256xf32>
    %c15_i32_49 = arith.constant 15 : i32
    %129 = tpu.dynamic_rotate %118 by %c15_i32_49 dim 1 : vector<16x256xf32>, i32 -> vector<16x256xf32>
    %cst_50 = arith.constant 0.000000e+00 : f32
    %130 = vector.shape_cast %16 : vector<1x256xi1> to vector<1x256xi1>
    %131 = vector.broadcast %130 : vector<1x256xi1> to vector<16x256xi1>
    %132 = vector.broadcast %cst_50 : f32 to vector<16x256xf32>
    %133 = arith.select %131, %129, %132 : vector<16x256xi1>, vector<16x256xf32>
    %c1_i32_51 = arith.constant 1 : i32
    %134 = tpu.dynamic_rotate %118 by %c1_i32_51 dim 1 : vector<16x256xf32>, i32 -> vector<16x256xf32>
    %cst_52 = arith.constant 0.000000e+00 : f32
    %135 = vector.shape_cast %12 : vector<1x256xi1> to vector<1x256xi1>
    %136 = vector.broadcast %135 : vector<1x256xi1> to vector<16x256xi1>
    %137 = vector.broadcast %cst_52 : f32 to vector<16x256xf32>
    %138 = arith.select %136, %134, %137 : vector<16x256xi1>, vector<16x256xf32>
    %c255_i32_53 = arith.constant 255 : i32
    %139 = tpu.dynamic_rotate %118 by %c255_i32_53 dim 1 : vector<16x256xf32>, i32 -> vector<16x256xf32>
    %cst_54 = arith.constant 0.000000e+00 : f32
    %140 = vector.shape_cast %14 : vector<1x256xi1> to vector<1x256xi1>
    %141 = vector.broadcast %140 : vector<1x256xi1> to vector<16x256xi1>
    %142 = vector.broadcast %cst_54 : f32 to vector<16x256xf32>
    %143 = arith.select %141, %139, %142 : vector<16x256xi1>, vector<16x256xf32>
    %c241_i32_55 = arith.constant 241 : i32
    %144 = tpu.dynamic_rotate %118 by %c241_i32_55 dim 1 : vector<16x256xf32>, i32 -> vector<16x256xf32>
    %cst_56 = arith.constant 0.000000e+00 : f32
    %145 = vector.shape_cast %17 : vector<1x256xi1> to vector<1x256xi1>
    %146 = vector.broadcast %145 : vector<1x256xi1> to vector<16x256xi1>
    %147 = vector.broadcast %cst_56 : f32 to vector<16x256xf32>
    %148 = arith.select %146, %144, %147 : vector<16x256xi1>, vector<16x256xf32>
    %c240_i32_57 = arith.constant 240 : i32
    %149 = tpu.dynamic_rotate %118 by %c240_i32_57 dim 1 : vector<16x256xf32>, i32 -> vector<16x256xf32>
    %cst_58 = arith.constant 0.000000e+00 : f32
    %150 = vector.shape_cast %10 : vector<1x256xi1> to vector<1x256xi1>
    %151 = vector.broadcast %150 : vector<1x256xi1> to vector<16x256xi1>
    %152 = vector.broadcast %cst_58 : f32 to vector<16x256xf32>
    %153 = arith.select %151, %149, %152 : vector<16x256xi1>, vector<16x256xf32>
    %c239_i32_59 = arith.constant 239 : i32
    %154 = tpu.dynamic_rotate %118 by %c239_i32_59 dim 1 : vector<16x256xf32>, i32 -> vector<16x256xf32>
    %cst_60 = arith.constant 0.000000e+00 : f32
    %155 = vector.shape_cast %18 : vector<1x256xi1> to vector<1x256xi1>
    %156 = vector.broadcast %155 : vector<1x256xi1> to vector<16x256xi1>
    %157 = vector.broadcast %cst_60 : f32 to vector<16x256xf32>
    %158 = arith.select %156, %154, %157 : vector<16x256xi1>, vector<16x256xf32>
    %159 = tpu.concatenate %123, %128, %133, %138, %118, %143, %148, %153, %158 in 0 : vector<16x256xf32>, vector<16x256xf32>, vector<16x256xf32>, vector<16x256xf32>, vector<16x256xf32>, vector<16x256xf32>, vector<16x256xf32>, vector<16x256xf32>, vector<16x256xf32> -> vector<144x256xf32>
    %160 = arith.truncf %159 : vector<144x256xf32> to vector<144x256xbf16>
    %c0_61 = arith.constant 0 : index
    %c0_62 = arith.constant 0 : index
    %161 = vector.load %arg6[%c0_61, %c0_62] : memref<16x144xbf16, #tpu.memory_space<vmem>>, vector<16x144xbf16>
    %cst_63 = arith.constant dense<0.000000e+00> : vector<16x256xf32>
    %162 = tpu.matmul %161, %160, %cst_63 {dimension_numbers = #tpu.dot_dimension_numbers<[1], [0], [0], [1], [0, 0, 1, 1], [], []>} : vector<16x144xbf16>, vector<144x256xbf16>, vector<16x256xf32> -> vector<16x256xf32>
    %c0_64 = arith.constant 0 : index
    %c0_65 = arith.constant 0 : index
    %163 = vector.load %arg7[%c0_64, %c0_65] : memref<16x1xf32, #tpu.memory_space<vmem>>, vector<16x1xf32>
    %164 = vector.broadcast %163 : vector<16x1xf32> to vector<16x256xf32>
    %165 = arith.addf %162, %164 : vector<16x256xf32>
    %cst_66 = arith.constant dense<0.000000e+00> : vector<16xf32>
    %166 = vector.multi_reduction <add>, %165, %cst_66 [1] : vector<16x256xf32> to vector<16xf32>
    %167 = vector.shape_cast %166 : vector<16xf32> to vector<16x1xf32>
    %cst_67 = arith.constant 3.906250e-03 : f32
    %168 = vector.broadcast %cst_67 : f32 to vector<16x1xf32>
    %169 = arith.mulf %167, %168 : vector<16x1xf32>
    %c0_68 = arith.constant 0 : index
    %c0_69 = arith.constant 0 : index
    %170 = vector.load %arg8[%c0_68, %c0_69] : memref<4x16xf32, #tpu.memory_space<vmem>>, vector<4x16xf32>
    %cst_70 = arith.constant dense<0.000000e+00> : vector<4x1xf32>
    %171 = tpu.matmul %170, %169, %cst_70 {dimension_numbers = #tpu.dot_dimension_numbers<[1], [0], [0], [1], [0, 0, 1, 1], [], []>} : vector<4x16xf32>, vector<16x1xf32>, vector<4x1xf32> -> vector<4x1xf32>
    %c0_71 = arith.constant 0 : index
    %c0_72 = arith.constant 0 : index
    %172 = vector.load %arg9[%c0_71, %c0_72] : memref<4x1xf32, #tpu.memory_space<vmem>>, vector<4x1xf32>
    %173 = arith.addf %171, %172 : vector<4x1xf32>
    %cst_73 = arith.constant 0.000000e+00 : f32
    %174 = vector.broadcast %cst_73 : f32 to vector<4x1xf32>
    %175 = arith.maximumf %173, %174 : vector<4x1xf32>
    %c0_74 = arith.constant 0 : index
    %c0_75 = arith.constant 0 : index
    %176 = vector.load %arg10[%c0_74, %c0_75] : memref<16x4xf32, #tpu.memory_space<vmem>>, vector<16x4xf32>
    %cst_76 = arith.constant dense<0.000000e+00> : vector<16x1xf32>
    %177 = tpu.matmul %176, %175, %cst_76 {dimension_numbers = #tpu.dot_dimension_numbers<[1], [0], [0], [1], [0, 0, 1, 1], [], []>} : vector<16x4xf32>, vector<4x1xf32>, vector<16x1xf32> -> vector<16x1xf32>
    %c0_77 = arith.constant 0 : index
    %c0_78 = arith.constant 0 : index
    %178 = vector.load %arg11[%c0_77, %c0_78] : memref<16x1xf32, #tpu.memory_space<vmem>>, vector<16x1xf32>
    %179 = arith.addf %177, %178 : vector<16x1xf32>
    %180 = arith.negf %179 : vector<16x1xf32>
    %181 = math.exp %180 : vector<16x1xf32>
    %cst_79 = arith.constant 1.000000e+00 : f32
    %182 = vector.broadcast %cst_79 : f32 to vector<16x1xf32>
    %183 = arith.addf %182, %181 : vector<16x1xf32>
    %184 = arith.divf %182, %183 : vector<16x1xf32>
    %185 = arith.mulf %184, %169 : vector<16x1xf32>
    %c0_80 = arith.constant 0 : index
    %c0_81 = arith.constant 0 : index
    %186 = vector.load %arg15[%c0_80, %c0_81] : memref<16x256xf32, #tpu.memory_space<vmem>>, vector<16x256xf32>
    %187 = vector.broadcast %185 : vector<16x1xf32> to vector<16x256xf32>
    %188 = arith.addf %186, %187 : vector<16x256xf32>
    %c17_i32_82 = arith.constant 17 : i32
    %189 = tpu.dynamic_rotate %188 by %c17_i32_82 dim 1 : vector<16x256xf32>, i32 -> vector<16x256xf32>
    %cst_83 = arith.constant 0.000000e+00 : f32
    %190 = vector.shape_cast %15 : vector<1x256xi1> to vector<1x256xi1>
    %191 = vector.broadcast %190 : vector<1x256xi1> to vector<16x256xi1>
    %192 = vector.broadcast %cst_83 : f32 to vector<16x256xf32>
    %193 = arith.select %191, %189, %192 : vector<16x256xi1>, vector<16x256xf32>
    %c16_i32_84 = arith.constant 16 : i32
    %194 = tpu.dynamic_rotate %188 by %c16_i32_84 dim 1 : vector<16x256xf32>, i32 -> vector<16x256xf32>
    %cst_85 = arith.constant 0.000000e+00 : f32
    %195 = vector.shape_cast %8 : vector<1x256xi1> to vector<1x256xi1>
    %196 = vector.broadcast %195 : vector<1x256xi1> to vector<16x256xi1>
    %197 = vector.broadcast %cst_85 : f32 to vector<16x256xf32>
    %198 = arith.select %196, %194, %197 : vector<16x256xi1>, vector<16x256xf32>
    %c15_i32_86 = arith.constant 15 : i32
    %199 = tpu.dynamic_rotate %188 by %c15_i32_86 dim 1 : vector<16x256xf32>, i32 -> vector<16x256xf32>
    %cst_87 = arith.constant 0.000000e+00 : f32
    %200 = vector.shape_cast %16 : vector<1x256xi1> to vector<1x256xi1>
    %201 = vector.broadcast %200 : vector<1x256xi1> to vector<16x256xi1>
    %202 = vector.broadcast %cst_87 : f32 to vector<16x256xf32>
    %203 = arith.select %201, %199, %202 : vector<16x256xi1>, vector<16x256xf32>
    %c1_i32_88 = arith.constant 1 : i32
    %204 = tpu.dynamic_rotate %188 by %c1_i32_88 dim 1 : vector<16x256xf32>, i32 -> vector<16x256xf32>
    %cst_89 = arith.constant 0.000000e+00 : f32
    %205 = vector.shape_cast %12 : vector<1x256xi1> to vector<1x256xi1>
    %206 = vector.broadcast %205 : vector<1x256xi1> to vector<16x256xi1>
    %207 = vector.broadcast %cst_89 : f32 to vector<16x256xf32>
    %208 = arith.select %206, %204, %207 : vector<16x256xi1>, vector<16x256xf32>
    %c255_i32_90 = arith.constant 255 : i32
    %209 = tpu.dynamic_rotate %188 by %c255_i32_90 dim 1 : vector<16x256xf32>, i32 -> vector<16x256xf32>
    %cst_91 = arith.constant 0.000000e+00 : f32
    %210 = vector.shape_cast %14 : vector<1x256xi1> to vector<1x256xi1>
    %211 = vector.broadcast %210 : vector<1x256xi1> to vector<16x256xi1>
    %212 = vector.broadcast %cst_91 : f32 to vector<16x256xf32>
    %213 = arith.select %211, %209, %212 : vector<16x256xi1>, vector<16x256xf32>
    %c241_i32_92 = arith.constant 241 : i32
    %214 = tpu.dynamic_rotate %188 by %c241_i32_92 dim 1 : vector<16x256xf32>, i32 -> vector<16x256xf32>
    %cst_93 = arith.constant 0.000000e+00 : f32
    %215 = vector.shape_cast %17 : vector<1x256xi1> to vector<1x256xi1>
    %216 = vector.broadcast %215 : vector<1x256xi1> to vector<16x256xi1>
    %217 = vector.broadcast %cst_93 : f32 to vector<16x256xf32>
    %218 = arith.select %216, %214, %217 : vector<16x256xi1>, vector<16x256xf32>
    %c240_i32_94 = arith.constant 240 : i32
    %219 = tpu.dynamic_rotate %188 by %c240_i32_94 dim 1 : vector<16x256xf32>, i32 -> vector<16x256xf32>
    %cst_95 = arith.constant 0.000000e+00 : f32
    %220 = vector.shape_cast %10 : vector<1x256xi1> to vector<1x256xi1>
    %221 = vector.broadcast %220 : vector<1x256xi1> to vector<16x256xi1>
    %222 = vector.broadcast %cst_95 : f32 to vector<16x256xf32>
    %223 = arith.select %221, %219, %222 : vector<16x256xi1>, vector<16x256xf32>
    %c239_i32_96 = arith.constant 239 : i32
    %224 = tpu.dynamic_rotate %188 by %c239_i32_96 dim 1 : vector<16x256xf32>, i32 -> vector<16x256xf32>
    %cst_97 = arith.constant 0.000000e+00 : f32
    %225 = vector.shape_cast %18 : vector<1x256xi1> to vector<1x256xi1>
    %226 = vector.broadcast %225 : vector<1x256xi1> to vector<16x256xi1>
    %227 = vector.broadcast %cst_97 : f32 to vector<16x256xf32>
    %228 = arith.select %226, %224, %227 : vector<16x256xi1>, vector<16x256xf32>
    %229 = tpu.concatenate %193, %198, %203, %208, %188, %213, %218, %223, %228 in 0 : vector<16x256xf32>, vector<16x256xf32>, vector<16x256xf32>, vector<16x256xf32>, vector<16x256xf32>, vector<16x256xf32>, vector<16x256xf32>, vector<16x256xf32>, vector<16x256xf32> -> vector<144x256xf32>
    %230 = arith.truncf %229 : vector<144x256xf32> to vector<144x256xbf16>
    %c0_98 = arith.constant 0 : index
    %c0_99 = arith.constant 0 : index
    %231 = vector.load %arg12[%c0_98, %c0_99] : memref<4x144xbf16, #tpu.memory_space<vmem>>, vector<4x144xbf16>
    %cst_100 = arith.constant dense<0.000000e+00> : vector<4x256xf32>
    %232 = tpu.matmul %231, %230, %cst_100 {dimension_numbers = #tpu.dot_dimension_numbers<[1], [0], [0], [1], [0, 0, 1, 1], [], []>} : vector<4x144xbf16>, vector<144x256xbf16>, vector<4x256xf32> -> vector<4x256xf32>
    %c0_101 = arith.constant 0 : index
    %c0_102 = arith.constant 0 : index
    %233 = vector.load %arg13[%c0_101, %c0_102] : memref<4x1xf32, #tpu.memory_space<vmem>>, vector<4x1xf32>
    %234 = vector.broadcast %233 : vector<4x1xf32> to vector<4x256xf32>
    %235 = arith.addf %232, %234 : vector<4x256xf32>
    %c0_103 = arith.constant 0 : index
    %c0_104 = arith.constant 0 : index
    %c0_105 = arith.constant 0 : index
    %236 = vector.load %arg14[%c0_103, %c0_104, %c0_105] : memref<1x4x256xf32, #tpu.memory_space<vmem>>, vector<1x4x256xf32>
    %237 = vector.shape_cast %236 : vector<1x4x256xf32> to vector<4x256xf32>
    %238 = vector.shape_cast %235 : vector<4x256xf32> to vector<1x4x256xf32>
    tpu.vector_store %arg14[%c0_103, %c0_104, %c0_105], %238 {strides = array<i32>} : memref<1x4x256xf32, #tpu.memory_space<vmem>>, vector<1x4x256xf32>,
    return
  }
  func.func @transform_0(%arg0: i32) -> (i32, i32, i32) {
    %c0_i32 = arith.constant 0 : i32
    %c0_i32_0 = arith.constant 0 : i32
    %c0_i32_1 = arith.constant 0 : i32
    return %arg0, %c0_i32, %c0_i32_0 : i32, i32, i32
  }
  func.func @transform_1(%arg0: i32) -> (i32, i32) {
    %c0_i32 = arith.constant 0 : i32
    %c0_i32_0 = arith.constant 0 : i32
    %c0_i32_1 = arith.constant 0 : i32
    return %c0_i32, %c0_i32_0 : i32, i32
  }
  func.func @transform_2(%arg0: i32) -> (i32, i32) {
    %c0_i32 = arith.constant 0 : i32
    %c0_i32_0 = arith.constant 0 : i32
    %c0_i32_1 = arith.constant 0 : i32
    return %c0_i32, %c0_i32_0 : i32, i32
  }
  func.func @transform_3(%arg0: i32) -> (i32, i32) {
    %c0_i32 = arith.constant 0 : i32
    %c0_i32_0 = arith.constant 0 : i32
    %c0_i32_1 = arith.constant 0 : i32
    return %c0_i32, %c0_i32_0 : i32, i32
  }
  func.func @transform_4(%arg0: i32) -> (i32, i32) {
    %c0_i32 = arith.constant 0 : i32
    %c0_i32_0 = arith.constant 0 : i32
    %c0_i32_1 = arith.constant 0 : i32
    return %c0_i32, %c0_i32_0 : i32, i32
  }
  func.func @transform_5(%arg0: i32) -> (i32, i32) {
    %c0_i32 = arith.constant 0 : i32
    %c0_i32_0 = arith.constant 0 : i32
    %c0_i32_1 = arith.constant 0 : i32
    return %c0_i32, %c0_i32_0 : i32, i32
  }
  func.func @transform_6(%arg0: i32) -> (i32, i32) {
    %c0_i32 = arith.constant 0 : i32
    %c0_i32_0 = arith.constant 0 : i32
    %c0_i32_1 = arith.constant 0 : i32
    return %c0_i32, %c0_i32_0 : i32, i32
  }
  func.func @transform_7(%arg0: i32) -> (i32, i32) {
    %c0_i32 = arith.constant 0 : i32
    %c0_i32_0 = arith.constant 0 : i32
    %c0_i32_1 = arith.constant 0 : i32
    return %c0_i32, %c0_i32_0 : i32, i32
  }
  func.func @transform_8(%arg0: i32) -> (i32, i32) {
    %c0_i32 = arith.constant 0 : i32
    %c0_i32_0 = arith.constant 0 : i32
    %c0_i32_1 = arith.constant 0 : i32
    return %c0_i32, %c0_i32_0 : i32, i32
  }
  func.func @transform_9(%arg0: i32) -> (i32, i32) {
    %c0_i32 = arith.constant 0 : i32
    %c0_i32_0 = arith.constant 0 : i32
    %c0_i32_1 = arith.constant 0 : i32
    return %c0_i32, %c0_i32_0 : i32, i32
  }
  func.func @transform_10(%arg0: i32) -> (i32, i32) {
    %c0_i32 = arith.constant 0 : i32
    %c0_i32_0 = arith.constant 0 : i32
    %c0_i32_1 = arith.constant 0 : i32
    return %c0_i32, %c0_i32_0 : i32, i32
  }
  func.func @transform_11(%arg0: i32) -> (i32, i32) {
    %c0_i32 = arith.constant 0 : i32
    %c0_i32_0 = arith.constant 0 : i32
    %c0_i32_1 = arith.constant 0 : i32
    return %c0_i32, %c0_i32_0 : i32, i32
  }
  func.func @transform_12(%arg0: i32) -> (i32, i32) {
    %c0_i32 = arith.constant 0 : i32
    %c0_i32_0 = arith.constant 0 : i32
    %c0_i32_1 = arith.constant 0 : i32
    return %c0_i32, %c0_i32_0 : i32, i32
  }
  func.func @transform_13(%arg0: i32) -> (i32, i32, i32) {
    %c0_i32 = arith.constant 0 : i32
    %c0_i32_0 = arith.constant 0 : i32
    %c0_i32_1 = arith.constant 0 : i32
    return %arg0, %c0_i32, %c0_i32_0 : i32, i32, i32
  }
}

</mosaic_0001>

<bundles_post_ra>
// kernel: tpu_custom_call.1
= control target key start
LH: loop header
LB: loop body
LE: loop exit
PB: predicated region body
PF: predicated region fallthrough
CT: control target
= control target key end

     0   :  { %s3288_s0 = inlined_call_operand.vmem [shape: f32[2,16,256], index: 0, kind: input, shape index: {}]   ;;  %s3289_s1 = inlined_call_operand.vmem [shape: bf16[16,144], index: 1, kind: input, shape index: {}]   ;;  %s3290_s2 = inlined_call_operand.vmem [shape: f32[16,1], index: 2, kind: input, shape index: {}]   ;;  %s3291_s3 = inlined_call_operand.vmem [shape: bf16[16,144], index: 3, kind: input, shape index: {}]   ;;  %s3292_s4 = inlined_call_operand.vmem [shape: f32[16,1], index: 4, kind: input, shape index: {}]   ;;  %s3293_s5 = inlined_call_operand.vmem [shape: bf16[16,144], index: 5, kind: input, shape index: {}]   ;;  %s3294_s6 = inlined_call_operand.vmem [shape: f32[16,1], index: 6, kind: input, shape index: {}]   ;;  %s3295_s7 = inlined_call_operand.vmem [shape: f32[4,16], index: 7, kind: input, shape index: {}]   ;;  %s3296_s8 = inlined_call_operand.vmem [shape: f32[4,1], index: 8, kind: input, shape index: {}]   ;;  %s3297_s9 = inlined_call_operand.vmem [shape: f32[16,4], index: 9, kind: input, shape index: {}]   ;;  %s3298_s10 = inlined_call_operand.vmem [shape: f32[16,1], index: 10, kind: input, shape index: {}]   ;;  %s3299_s11 = inlined_call_operand.vmem [shape: bf16[4,144], index: 11, kind: input, shape index: {}]   ;;  %s3300_s12 = inlined_call_operand.vmem [shape: f32[4,1], index: 12, kind: input, shape index: {}]   ;;  %s3301_s13 = inlined_call_operand.hbm [shape: f32[2,4,256], index: 13, kind: output, shape index: {}]  }
   0x1   :  { %3347 = sst [smem:[#allocation9_spill]] %s3288_s0 }
   0x2   :  { %3348 = sst [smem:[#allocation10_spill]] %s3289_s1 }
   0x3   :  { %3349 = sst [smem:[#allocation11_spill]] %s3290_s2 }
   0x4   :  { %3350 = sst [smem:[#allocation12_spill]] %s3291_s3 }
   0x5   :  { %18 = vsyncpa [#allocation4], 0 }
   0x6   :  { %20 = vsyncpa [#allocation4 + $0x1], 0  ;;  %s2436_s25 = smov 0   ;;  %s2438_s26 = smov 0  }
   0x7   :  { %s2440_s27 = smov 0   ;;  %s2442_s28 = smov 0  }
   0x8 LB: > { %3351 = sst [smem:[#allocation6_spill]] %s2347_s27  ;;  %s2457_s29 = sadd.s32 4294967295, %s2351_s28   ;;  %s2351_s28 = sphi %s2442_s28, %s3533_s28   ;;  %s2347_s27 = sphi %s2440_s27, %s3535_s27   ;;  %s2343_s26 = sphi %s2438_s26, %s3537_s26   ;;  %s2339_s25 = sphi %s2436_s25, %s3536_s25  }
   0x9   : > { %s1655_s30 = sadd.s32 4294967294, %s2351_s28   ;;  %s2461_s14 = sadd.s32 1, %s2351_s28  }
   0xa   : > { %3352 = sst [smem:[#allocation7_spill]] %s2461_s14  ;;  %s311_s15 = sadd.s32 1, %s2347_s27 }
   0xb   : > { %s308_s16 = ssub.s32 %s2351_s28, %s2461_s14  ;;  %p321_p0 = scmp.ne.s32.totalorder %s2347_s27, %s2343_s26 }
   0xc   : > { %p309_p1 = scmp.eq.s32.totalorder %s308_s16, 0  ;;  %p322_p2 = scmp.eq.s32.totalorder %s2457_s29, 1 }
   0xd   : > { %p327_p3 = scmp.ne.s32.totalorder %s2343_s26, %s2339_s25  ;;  %p328_p4 = scmp.eq.s32.totalorder %s1655_s30, 1 }
   0xe   : > { %s2472_s17 = scalar_select %p309_p1, %s2347_s27, %s311_s15  }
   0xf   : > { %p2474_p5 = por %p322_p2, %p321_p0  ;;  %p2478_p6 = por %p328_p4, %p327_p3 }
  0x10   : > { %3353 = sst [smem:[#allocation8_spill]] %s2472_s17  ;;  %p1658_p7 = scmp.ge.s32.totalorder %s2351_s28, 1 }
  0x11   : > { %p390_p8 = scmp.lt.s32.totalorder %s2351_s28, 3 }
  0x13   : > { %p391_p9 = pnand %p1658_p7, %p390_p8 }
  0x14   : > { %p434_p10 = scmp.lt.s32.totalorder (!%p391_p9), %s2457_s29, 1  ;;  %s3356_s0 = sld [smem:[#allocation9_spill]] (!%p391_p9)  ;;  %vm3318_vm0 = vcmask (!%p391_p9), 130048   ;;  %v2361_v11 = vmov (!%p391_p9), 0   ;;  %v440_v12 = vlaneseq (!%p391_p9)  ;;  %v3367_v41 = vmov (!%p391_p9), 0 }
  0x15   : > { %394 = sbr.rel (%p391_p9) target bundleno = 2297 (0x8f9), region = 72  ;;  %s3308_s30 = smov (!%p391_p9), 16   ;;  %2030 = vset.pattern.permute.xlu0 (!%p391_p9), %v2361_v11  ;;  %2031 = vset.pattern.permute.xlu1 (!%p391_p9), %v2361_v11  ;;  %v3369_v48 = vmov (!%p391_p9), 0  ;;  %v3375_v61 = vmov (!%p391_p9), 0 }
  0x16   : > { %s3312_s15 = smov (!%p391_p9), 17   ;;  %s3304_s16 = smov (!%p391_p9), 15   ;;  %v2531_v13 = vand.u32 (!%p391_p9), 127, %v440_v12 }
  0x17   : > { %s3310_s22 = smov (!%p391_p9), 113   ;;  %s3345_s23 = smov (!%p391_p9), 112  }
  0x18   : > { %s3357_s1 = sld [smem:[#allocation10_spill]] (!%p391_p9)  ;;  %s3358_s2 = sld [smem:[#allocation11_spill]] (!%p391_p9)  ;;  %v442_v14 = vadd.s32 (!%p391_p9), 128, %v2531_v13  ;;  %v445_v16 = vshra.s32 (!%p391_p9), %v2531_v13, 4  ;;  %v443_v19 = vand.u32 (!%p391_p9), 15, %v2531_v13  ;;  %vm3315_vm5 = vcmp.lt.s32.totalorder (!%p391_p9), %v2531_v13, 16 }
  0x19   : > { %vm3317_vm7 = vcmp.lt.s32.totalorder (!%p391_p9), %v2531_v13, 17  ;;  %vm3314_vm10 = vcmp.lt.s32.totalorder (!%p391_p9), %v2531_v13, 15  ;;  %s3416_s3 = sld [smem:[#allocation12_spill]] (!%p391_p9) }
  0x1a   : > { %v446_v15 = vshra.s32 (!%p391_p9), %v442_v14, 4  ;;  %v444_v17 = vand.u32 (!%p391_p9), 15, %v442_v14  ;;  %v2538_v20 = vand.u32 (!%p391_p9), 15, %v445_v16  ;;  %vm2546_vm4 = vcmp.ge.s32.totalorder (!%p391_p9), %v443_v19, 1 }
  0x1b   : > { %vm2606_vm15 = vcmp.le.s32.totalorder (!%p391_p9), %v443_v19, 14 }
  0x1c   : > { %s435_s20 = scalar_select %p434_p10, %s2457_s29, 1  ;;  %v2535_v18 = vand.u32 15, %v446_v15  ;;  %vm2541_vm2 = vcmp.ge.s32.totalorder %v444_v17, 1  ;;  %vm449_vm3 = vcmp.ge.s32.totalorder %v2538_v20, 1  ;;  %vm2565_vm11 = vcmp.le.s32.totalorder %v444_v17, 14 }
  0x1d   : > { %vm457_vm8 = vmand %vm449_vm3, %vm2546_vm4 }
  0x1e   : > { %s1876_s21 = sshll.u32 %s435_s20, 5  ;;  %s3302_s20 = smov 1   ;;  %v2274_v8 = vld [vmem:[%s3357_s1 + $0x4] ss:$8 sps:$4 sm:$0xff]   ;;  %vm450_vm1 = vcmp.ge.s32.totalorder %v2535_v18, 1  ;;  %vm2577_vm12 = vmpackc.low %vm457_vm8, %vm457_vm8 }
  0x1f   : > { %s438_s24 = scalar_lea.vmem %s3356_s0, %s1876_s21  ;;  %s3306_s21 = smov 127   ;;  %1712 = vmatprep.mubr.msk.bf16.mxu0 %vm3318_vm0, %v2274_v8  ;;  %v657_v9 = vld [vmem:[%s3358_s2] sm:$0xff]  ;;  %v658_v10 = vld [vmem:[%s3358_s2 + $0x8] sm:$0xff]  ;;  %vm458_vm6 = vmand %vm450_vm1, %vm2541_vm2  ;;  %v3368_v41 = vsel %vm2577_vm12, 4294967295, %v3367_v41  ;;  %vm3322_vm0 = vcmp.le.s32.totalorder %v2535_v18, 14 }
  0x20   : > { %v2489_v0 = vld [vmem:[%s438_s24] sm:$0xff]  ;;  %v2491_v1 = vld [vmem:[%s438_s24 + $0x10] sm:$0xff]  ;;  %v2493_v2 = vld [vmem:[%s438_s24 + $0x8] sm:$0xff] }
  0x21   : > { %v1960_v3 = vpack.i.bf16 %v2491_v1, %v2489_v0  ;;  %v2497_v4 = vld [vmem:[%s438_s24 + $0x18] sm:$0xff]  ;;  %v645_v7 = vpack.c.bf16 %v2491_v1, %v2489_v0  ;;  %s3331_s24 = smov 111   ;;  %vm2560_vm9 = vmpackc.low %vm458_vm6, %vm458_vm6  ;;  %vm3316_vm6 = vcmp.lt.s32.totalorder %v2531_v13, 1 }
  0x22   : > { %v1965_v5 = vpack.i.bf16 %v2497_v4, %v2493_v2  ;;  %v646_v6 = vpack.c.bf16 %v2497_v4, %v2493_v2  ;;  %vm2588_vm13 = vmpackc.low %vm450_vm1, %vm450_vm1 }
  0x23   : > { %1961 = vrot.lane.b32.xlu1 %v1960_v3, %s3308_s30  ;;  %1951 = vrot.lane.b32.xlu0 %v1960_v3, %s3312_s15  ;;  %v3370_v48 = vsel %vm2588_vm13, 4294967295, %v3369_v48  ;;  %vm2596_vm14 = vmand %vm450_vm1, %vm2565_vm11 }
  0x24   : > { %vm2621_vm1 = vmpackc.low %vm449_vm3, %vm449_vm3 }
  0x25   : > { %v3376_v61 = vsel %vm2621_vm1, 4294967295, %v3375_v61  ;;  %vm2633_vm8 = vmpackc.low %vm2596_vm14, %vm2596_vm14 }
  0x26   : > { %vm2660_vm14 = vmpackc.low %vm2541_vm2, %vm2541_vm2 }
  0x27   : > { %1966 = vrot.lane.b32.xlu1 %v1965_v5, %s3308_s30  ;;  %1956 = vrot.lane.b32.xlu0 %v1965_v5, %s3312_s15  ;;  %s3414_s30 = smov 127   ;;  %s3415_s15 = smov 113  }
  0x2b   : > { %1976 = vrot.lane.b32.xlu1 %v1965_v5, %s3304_s16  ;;  %1971 = vrot.lane.b32.xlu0 %v1960_v3, %s3304_s16  ;;  %s3410_s16 = smov 17  }
  0x2f   : > { %1986 = vrot.lane.b32.xlu1 %v1965_v5, %s3302_s20  ;;  %1981 = vrot.lane.b32.xlu0 %v1960_v3, %s3302_s20  ;;  %s3411_s20 = smov 16  }
  0x33   : > { %1996 = vrot.lane.b32.xlu1 %v1965_v5, %s3306_s21  ;;  %1991 = vrot.lane.b32.xlu0 %v1960_v3, %s3306_s21  ;;  %s3412_s21 = smov 15  }
  0x37   : > { %2006 = vrot.lane.b32.xlu1 %v1965_v5, %s3310_s22  ;;  %2001 = vrot.lane.b32.xlu0 %v1960_v3, %s3310_s22  ;;  %s3413_s22 = smov 1  }
  0x3b   : > { %2016 = vrot.lane.b32.xlu1 %v1965_v5, %s3345_s23  ;;  %2011 = vrot.lane.b32.xlu0 %v1960_v3, %s3345_s23 }
  0x3f   : > { %2026 = vrot.lane.b32.xlu1 %v1965_v5, %s3331_s24  ;;  %2021 = vrot.lane.b32.xlu0 %v1960_v3, %s3331_s24 }
  0x43   : > { %661 = vperm.xlu0 %2030, %v657_v9   ;;  %666 = vperm.xlu1 %2031, %v658_v10   ;;  %v3377_v10 = vmov 0 }
  0x44   : > { %v3378_v10 = vsel %vm2633_vm8, 4294967295, %v3377_v10 }
  0x95   : > { %v1962_v21 = vpop.permute.xlu1 %1961  ;;  %v1952_v22 = vpop.permute.xlu0 %1951 }
  0x96   : > { %v1964_v25 = vunpack.i.h.bf16 %v1962_v21  ;;  %v1963_v26 = vunpack.i.l.bf16 %v1962_v21  ;;  %v1954_v33 = vunpack.i.h.bf16 %v1952_v22  ;;  %v1953_v34 = vunpack.i.l.bf16 %v1952_v22 }
  0x99   : > { %v1967_v27 = vpop.permute.xlu1 %1966  ;;  %v1957_v28 = vpop.permute.xlu0 %1956 }
  0x9a   : > { %v1969_v29 = vunpack.i.h.bf16 %v1967_v27  ;;  %v1968_v30 = vunpack.i.l.bf16 %v1967_v27  ;;  %v1959_v31 = vunpack.i.h.bf16 %v1957_v28  ;;  %v1958_v32 = vunpack.i.l.bf16 %v1957_v28 }
  0x9b   : > { %v3379_v27 = vmov 0 }
  0x9c   : > { %v499_v37 = vsel %vm3315_vm5, %v1963_v26, %v1968_v30  ;;  %v500_v38 = vsel %vm3315_vm5, %v1964_v25, %v1969_v29  ;;  %v478_v39 = vsel %vm3317_vm7, %v1953_v34, %v1958_v32  ;;  %v479_v40 = vsel %vm3317_vm7, %v1954_v33, %v1959_v31 }
  0x9d   : > { %v1977_v42 = vpop.permute.xlu1 %1976  ;;  %v1972_v43 = vpop.permute.xlu0 %1971  ;;  %v1665_v44 = vpack.c.bf16 %v479_v40, %v478_v39  ;;  %v480_v45 = vsel %vm3317_vm7, %v1958_v32, %v1953_v34  ;;  %v481_v46 = vsel %vm3317_vm7, %v1959_v31, %v1954_v33  ;;  %v501_v54 = vsel %vm3315_vm5, %v1968_v30, %v1963_v26  ;;  %vm2716_vm7 = vmpackc.low %vm2606_vm15, %vm2606_vm15 }
  0x9e   : > { %v1979_v47 = vunpack.i.h.bf16 %v1977_v42  ;;  %v1668_v49 = vpack.c.bf16 %v481_v46, %v480_v45  ;;  %v1978_v50 = vunpack.i.l.bf16 %v1977_v42  ;;  %v1974_v51 = vunpack.i.h.bf16 %v1972_v43 }
  0x9f   : > { %v1973_v52 = vunpack.i.l.bf16 %v1972_v43  ;;  %v502_v55 = vsel %vm3315_vm5, %v1969_v29, %v1964_v25  ;;  %v1671_v56 = vpack.c.bf16 %v500_v38, %v499_v37  ;;  %1666 = vmatprep.subr.msk.bf16.mxu0 %vm2560_vm9, %v1665_v44  ;;  %v3381_v30 = vmov 0 }
  0xa0   : > { %1669 = vmatpush1.bf16.msk.msra.mxu0 %vm2577_vm12, %v1668_v49  ;;  %v521_v58 = vsel %vm3314_vm10, %v1974_v51, %v1979_v47  ;;  %v523_v59 = vsel %vm3314_vm10, %v1979_v47, %v1974_v51  ;;  %v1674_v11 = vpack.c.bf16 %v502_v55, %v501_v54  ;;  %v3382_v30 = vsel %vm2660_vm14, 4294967295, %v3381_v30 }
  0xa1   : > { %v520_v60 = vsel %vm3314_vm10, %v1973_v52, %v1978_v50  ;;  %v1987_v62 = vpop.permute.xlu1 %1986  ;;  %v1982_v63 = vpop.permute.xlu0 %1981  ;;  %v522_v3 = vsel %vm3314_vm10, %v1978_v50, %v1973_v52  ;;  %1672 = vmatprep.subr.msk.bf16.mxu0 %vm2588_vm13, %v1671_v56  ;;  %vm459_vm10 = vmand %vm449_vm3, %vm2606_vm15  ;;  %vm3321_vm5 = vcmp.lt.s32.totalorder %v2531_v13, 127  ;;  %v3383_v38 = vmov 0 }
  0xa2   : > { %v1677_v5 = vpack.c.bf16 %v521_v58, %v520_v60  ;;  %v1989_v8 = vunpack.i.h.bf16 %v1987_v62  ;;  %v1988_v9 = vunpack.i.l.bf16 %v1987_v62  ;;  %v1984_v12 = vunpack.i.h.bf16 %v1982_v63  ;;  %vm2653_vm3 = vmpackc.low %vm459_vm10, %vm459_vm10 }
  0xa3   : > { %v1983_v14 = vunpack.i.l.bf16 %v1982_v63  ;;  %v1680_v15 = vpack.c.bf16 %v523_v59, %v522_v3  ;;  %v3380_v27 = vsel %vm2653_vm3, 4294967295, %v3379_v27  ;;  %vm2672_vm10 = vmpackc.low %vm2546_vm4, %vm2546_vm4  ;;  %v3385_v56 = vmov 0 }
  0xa4   : > { %1675 = vmatpush1.bf16.msk.msra.mxu0 %vm2621_vm1, %v1674_v11  ;;  %v542_v16 = vsel %vm3316_vm6, %v1984_v12, %v1989_v8  ;;  %v544_v17 = vsel %vm3316_vm6, %v1989_v8, %v1984_v12  ;;  %v3384_v38 = vsel %vm2672_vm10, 4294967295, %v3383_v38 }
  0xa5   : > { %v541_v19 = vsel %vm3316_vm6, %v1983_v14, %v1988_v9  ;;  %v1997_v21 = vpop.permute.xlu1 %1996  ;;  %v1992_v22 = vpop.permute.xlu0 %1991  ;;  %v543_v25 = vsel %vm3316_vm6, %v1988_v9, %v1983_v14  ;;  %1678 = vmatprep.subr.msk.bf16.mxu0 %vm2633_vm8, %v1677_v5  ;;  %vm3329_vm6 = vcmp.lt.s32.totalorder %v2531_v13, 113 }
  0xa6   : > { %v1683_v26 = vpack.c.bf16 %v542_v16, %v541_v19  ;;  %v1999_v28 = vunpack.i.h.bf16 %v1997_v21  ;;  %v1998_v29 = vunpack.i.l.bf16 %v1997_v21  ;;  %v1994_v31 = vunpack.i.h.bf16 %v1992_v22 }
  0xa7   : > { %v1993_v32 = vunpack.i.l.bf16 %v1992_v22  ;;  %v1686_v33 = vpack.c.bf16 %v544_v17, %v543_v25 }
  0xa8   : > { %1681 = vmatpush1.bf16.msk.msra.mxu0 %vm2653_vm3, %v1680_v15  ;;  %v565_v39 = vsel %vm3321_vm5, %v1999_v28, %v1994_v31  ;;  %v563_v46 = vsel %vm3321_vm5, %v1994_v31, %v1999_v28  ;;  %v2272_v31 = vld [vmem:[%s3357_s1] ss:$8 sps:$4 sm:$0xff]   ;;  %s3417_s1 = smov 111  }
  0xa9   : > { %v2007_v34 = vpop.permute.xlu1 %2006  ;;  %v2002_v37 = vpop.permute.xlu0 %2001  ;;  %1684 = vmatprep.subr.msk.bf16.mxu0 %vm2660_vm14, %v1683_v26  ;;  %v564_v40 = vsel %vm3321_vm5, %v1998_v29, %v1993_v32  ;;  %v562_v50 = vsel %vm3321_vm5, %v1993_v32, %v1998_v29  ;;  %vm2700_vm14 = vmpackc.low %vm2565_vm11, %vm2565_vm11 }
  0xaa   : > { %v2009_v42 = vunpack.i.h.bf16 %v2007_v34  ;;  %v2008_v43 = vunpack.i.l.bf16 %v2007_v34  ;;  %v2004_v44 = vunpack.i.h.bf16 %v2002_v37  ;;  %v2003_v45 = vunpack.i.l.bf16 %v2002_v37  ;;  %vm462_vm5 = vmand %vm3322_vm0, %vm2541_vm2 }
  0xab   : > { %v1689_v51 = vpack.c.bf16 %v565_v39, %v564_v40  ;;  %v3386_v56 = vsel %vm2700_vm14, 4294967295, %v3385_v56  ;;  %v1692_v2 = vpack.c.bf16 %v563_v46, %v562_v50  ;;  %vm3389_vm2 = vcmp.lt.s32.totalorder %v2531_v13, 112  ;;  %vm2732_vm8 = vmpackc.low %vm462_vm5, %vm462_vm5  ;;  %v2277_v46 = vld [vmem:[%s3416_s3 + $0x4] ss:$8 sps:$4 sm:$0xff]  }
  0xac   : > { %1687 = vmatpush1.bf16.msk.msra.mxu0 %vm2672_vm10, %v1686_v33  ;;  %v586_v54 = vsel %vm3329_vm6, %v2009_v42, %v2004_v44  ;;  %v585_v55 = vsel %vm3329_vm6, %v2008_v43, %v2003_v45  ;;  %v584_v4 = vsel %vm3329_vm6, %v2004_v44, %v2009_v42  ;;  %v583_v62 = vsel %vm3329_vm6, %v2003_v45, %v2008_v43  ;;  %vm3390_vm0 = vmmov %vm3389_vm2 }
  0xad   : > { %v2017_v47 = vpop.permute.xlu1 %2016  ;;  %v2012_v49 = vpop.permute.xlu0 %2011  ;;  %690 = vmatprep.subr.bf16.mxu0 %v646_v6  ;;  %v1695_v63 = vpack.c.bf16 %v586_v54, %v585_v55  ;;  %vm3391_vm10 = vcmp.le.s32.totalorder %v2538_v20, 14  ;;  %vm3330_vm6 = vcmp.lt.s32.totalorder %v2531_v13, 111  ;;  %v1698_v11 = vpack.c.bf16 %v584_v4, %v583_v62  ;;  %vm3397_vm5 = vmmov %vm3389_vm2 }
  0xae   : > { %v2019_v52 = vunpack.i.h.bf16 %v2017_v47  ;;  %v2018_v53 = vunpack.i.l.bf16 %v2017_v47  ;;  %v2014_v58 = vunpack.i.h.bf16 %v2012_v49  ;;  %v2013_v59 = vunpack.i.l.bf16 %v2012_v49  ;;  %vm461_vm3 = vmand %vm3391_vm10, %vm2546_vm4  ;;  %v881_v47 = vld [vmem:[%s3292_s4] sm:$0xff]  ;;  %v882_v49 = vld [vmem:[%s3292_s4 + $0x8] sm:$0xff] }
  0xaf   : > { %vm3396_vm4 = vmmov %vm3389_vm2  ;;  %vm3398_vm10 = vcmp.le.s32.totalorder %v2535_v18, 14 }
  0xb0   : > { %691 = vmatpush1.bf16.msra.mxu0 %v645_v7  ;;  %v607_v0 = vsel %vm3389_vm2, %v2019_v52, %v2014_v58  ;;  %v606_v1 = vsel %vm3390_vm0, %v2018_v53, %v2013_v59  ;;  %v3392_v7 = vmov 0  ;;  %vm2739_vm0 = vmpackc.low %vm461_vm3, %vm461_vm3  ;;  %v605_v24 = vsel %vm3396_vm4, %v2014_v58, %v2019_v52 }
  0xb1   : > { %v2027_v60 = vpop.permute.xlu1 %2026  ;;  %v2022_v23 = vpop.permute.xlu0 %2021  ;;  %1690 = vmatprep.subr.msk.bf16.mxu0 %vm2700_vm14, %v1689_v51  ;;  %v3393_v7 = vsel %vm2732_vm8, 4294967295, %v3392_v7  ;;  %v604_v14 = vsel %vm3397_vm5, %v2013_v59, %v2018_v53  ;;  %v1701_v15 = vpack.c.bf16 %v607_v0, %v606_v1  ;;  %vm2752_vm2 = vmpackc.low %vm3398_vm10, %vm3398_vm10  ;;  %vm3402_vm5 = vcmp.le.s32.totalorder %v2538_v20, 14 }
  0xb2   : > { %v2029_v3 = vunpack.i.h.bf16 %v2027_v60  ;;  %v2028_v5 = vunpack.i.l.bf16 %v2027_v60  ;;  %v2024_v8 = vunpack.i.h.bf16 %v2022_v23  ;;  %v2023_v9 = vunpack.i.l.bf16 %v2022_v23  ;;  %vm3401_vm3 = vmmov %vm3398_vm10 }
  0xb3   : > { %vm464_vm4 = vmand %vm3401_vm3, %vm2565_vm11  ;;  %v1704_v21 = vpack.c.bf16 %v605_v24, %v604_v14 }
  0xb4   : > { %1693 = vmatpush1.bf16.msk.msra.mxu0 %vm2716_vm7, %v1692_v2  ;;  %v628_v17 = vsel %vm3330_vm6, %v2029_v3, %v2024_v8  ;;  %v627_v19 = vsel %vm3330_vm6, %v2028_v5, %v2023_v9  ;;  %vm2769_vm10 = vmpackc.low %vm3402_vm5, %vm3402_vm5  ;;  %v626_v25 = vsel %vm3330_vm6, %v2024_v8, %v2029_v3  ;;  %v625_v36 = vsel %vm3330_vm6, %v2023_v9, %v2028_v5 }
  0xb5   : > { %1696 = vmatprep.subr.msk.bf16.mxu0 %vm2732_vm8, %v1695_v63  ;;  %v1707_v26 = vpack.c.bf16 %v628_v17, %v627_v19  ;;  %vm2779_vm11 = vmpackc.low %vm464_vm4, %vm464_vm4  ;;  %v1710_v28 = vpack.c.bf16 %v626_v25, %v625_v36  ;;  %vm3419_vm4 = vcmp.lt.s32.totalorder %v2531_v13, 17 }
  0xb6   : > { %vm3407_vm3 = vmmov %vm3402_vm5 }
  0xb7   : > { %vm463_vm5 = vmand %vm3407_vm3, %vm2606_vm15  ;;  %vm3418_vm15 = vcmask 130048  }
  0xb8   : > { %1699 = vmatpush1.bf16.msk.msra.mxu0 %vm2739_vm0, %v1698_v11  ;;  %vm2791_vm6 = vmpackc.low %vm463_vm5, %vm463_vm5  ;;  %1763 = vmatprep.mubr.msk.bf16.mxu1 %vm3418_vm15, %v2277_v46 }
  0xb9   : > { %1702 = vmatprep.subr.msk.bf16.mxu0 %vm2752_vm2, %v1701_v15  ;;  %vm3420_vm3 = vmmov %vm3419_vm4 }
  0xba   : > { %vm3421_vm5 = vmmov %vm3420_vm3 }
  0xbb   : > { %vm3422_vm15 = vmmov %vm3420_vm3 }
  0xbc   : > { %1705 = vmatpush1.bf16.msk.msra.mxu0 %vm2769_vm10, %v1704_v21 }
  0xbd   : > { %1708 = vmatprep.subr.msk.bf16.mxu0 %vm2779_vm11, %v1707_v26 }
  0xc0   : > { %1711 = vmatpush1.bf16.msk.msra.mxu0 %vm2791_vm6, %v1710_v28 }
  0xc2   : > { %v662_v20 = vpop.permute.xlu0 %661  ;;  %v667_v32 = vpop.permute.xlu1 %666 }
  0xc3   : > { %715 = vmatmul.mubr.bf16.vlgmr.msra.gmra.mrb[0].mxu0 %v2272_v31 }
 0x196   : > { %v716_v57 = vpop.f32.mrb[0].mxu0 }
 0x197   : > { %v718_v33 = vpop.f32.mrb[1].mxu0  ;;  %v2800_v37 = vadd.f32 %v716_v57, %v662_v20 }
 0x198   : > { %v720_v34 = vpop.f32.mrb[2].mxu0  ;;  %v2804_v42 = vadd.f32 %v718_v33, %v662_v20 }
 0x199   : > { %v2802_v39 = vadd.f32 %v720_v34, %v667_v32  ;;  %v722_v40 = vpop.f32.mrb[3].mxu0 }
 0x19a   : > { %v2806_v43 = vadd.f32 %v722_v40, %v667_v32 }
 0x19b   : > { %v2032_v44 = vpack.i.bf16 %v2802_v39, %v2800_v37 }
 0x19c   : > { %v2052_v45 = vpack.i.bf16 %v2806_v43, %v2804_v42 }
 0x19d   : > { %2033 = vrot.lane.b32.xlu1 %v2032_v44, %s3410_s16 }
 0x19e   : > { %2053 = vrot.lane.b32.xlu0 %v2052_v45, %s3410_s16 }
 0x1a1   : > { %2038 = vrot.lane.b32.xlu1 %v2032_v44, %s3411_s20 }
 0x1a2   : > { %2058 = vrot.lane.b32.xlu0 %v2052_v45, %s3411_s20 }
 0x1a5   : > { %2043 = vrot.lane.b32.xlu1 %v2032_v44, %s3412_s21 }
 0x1a6   : > { %2063 = vrot.lane.b32.xlu0 %v2052_v45, %s3412_s21 }
 0x1a9   : > { %2048 = vrot.lane.b32.xlu1 %v2032_v44, %s3413_s22 }
 0x1aa   : > { %2068 = vrot.lane.b32.xlu0 %v2052_v45, %s3413_s22 }
 0x1ad   : > { %2073 = vrot.lane.b32.xlu1 %v2032_v44, %s3414_s30 }
 0x1ae   : > { %2093 = vrot.lane.b32.xlu0 %v2052_v45, %s3414_s30 }
 0x1b1   : > { %2078 = vrot.lane.b32.xlu1 %v2032_v44, %s3415_s15 }
 0x1b2   : > { %2098 = vrot.lane.b32.xlu0 %v2052_v45, %s3415_s15 }
 0x1b5   : > { %2083 = vrot.lane.b32.xlu1 %v2032_v44, %s3345_s23 }
 0x1b6   : > { %2103 = vrot.lane.b32.xlu0 %v2052_v45, %s3345_s23 }
 0x1b9   : > { %2088 = vrot.lane.b32.xlu1 %v2032_v44, %s3417_s1 }
 0x1ba   : > { %2108 = vrot.lane.b32.xlu0 %v2052_v45, %s3417_s1 }
 0x1bd   : > { %885 = vperm.xlu1 %2031, %v881_v47  }
 0x1be   : > { %890 = vperm.xlu0 %2030, %v882_v49  }
 0x20f   : > { %v2034_v50 = vpop.permute.xlu1 %2033 }
 0x210   : > { %v2036_v51 = vunpack.i.h.bf16 %v2034_v50  ;;  %v2035_v52 = vunpack.i.l.bf16 %v2034_v50  ;;  %v2054_v53 = vpop.permute.xlu0 %2053 }
 0x211   : > { %v2056_v54 = vunpack.i.h.bf16 %v2054_v53  ;;  %v2055_v55 = vunpack.i.l.bf16 %v2054_v53 }
 0x213   : > { %v2039_v58 = vpop.permute.xlu1 %2038  ;;  %v741_v59 = vsel %vm3419_vm4, %v2035_v52, %v2055_v55  ;;  %v742_v2 = vsel %vm3420_vm3, %v2036_v51, %v2056_v54  ;;  %v743_v4 = vsel %vm3421_vm5, %v2055_v55, %v2035_v52  ;;  %v744_v60 = vsel %vm3422_vm15, %v2056_v54, %v2036_v51 }
 0x214   : > { %v2041_v23 = vunpack.i.h.bf16 %v2039_v58  ;;  %v2040_v62 = vunpack.i.l.bf16 %v2039_v58  ;;  %v2059_v63 = vpop.permute.xlu0 %2058  ;;  %v1716_v0 = vpack.c.bf16 %v742_v2, %v741_v59  ;;  %v1719_v1 = vpack.c.bf16 %v744_v60, %v743_v4 }
 0x215   : > { %v2061_v3 = vunpack.i.h.bf16 %v2059_v63  ;;  %v2060_v5 = vunpack.i.l.bf16 %v2059_v63  ;;  %vm3423_vm4 = vcmp.lt.s32.totalorder %v2531_v13, 16 }
 0x216   : > { %1717 = vmatprep.subr.msk.bf16.mxu1 %vm2560_vm9, %v1716_v0  ;;  %vm3424_vm3 = vmmov %vm3423_vm4 }
 0x217   : > { %v757_v8 = vsel %vm3423_vm4, %v2040_v62, %v2060_v5  ;;  %v758_v9 = vsel %vm3424_vm3, %v2041_v23, %v2061_v3  ;;  %vm3425_vm5 = vmmov %vm3424_vm3  ;;  %v2044_v14 = vpop.permute.xlu1 %2043  ;;  %1720 = vmatpush1.bf16.msk.msra.mxu1 %vm2577_vm12, %v1719_v1  ;;  %vm3427_vm4 = vcmp.lt.s32.totalorder %v2531_v13, 15 }
 0x218   : > { %v759_v11 = vsel %vm3425_vm5, %v2060_v5, %v2040_v62  ;;  %vm3426_vm15 = vmmov %vm3424_vm3  ;;  %v1722_v15 = vpack.c.bf16 %v758_v9, %v757_v8  ;;  %v2046_v19 = vunpack.i.h.bf16 %v2044_v14  ;;  %v2045_v21 = vunpack.i.l.bf16 %v2044_v14  ;;  %v2064_v25 = vpop.permute.xlu0 %2063 }
 0x219   : > { %v760_v24 = vsel %vm3426_vm15, %v2061_v3, %v2041_v23  ;;  %v2066_v36 = vunpack.i.h.bf16 %v2064_v25  ;;  %v2065_v26 = vunpack.i.l.bf16 %v2064_v25  ;;  %vm3428_vm3 = vmmov %vm3427_vm4  ;;  %v870_v23 = vpack.c.bf16 %v2806_v43, %v2804_v42 }
 0x21a   : > { %v1725_v17 = vpack.c.bf16 %v760_v24, %v759_v11  ;;  %1723 = vmatprep.subr.msk.bf16.mxu1 %vm2588_vm13, %v1722_v15  ;;  %vm3429_vm5 = vmmov %vm3428_vm3  ;;  %vm3436_vm13 = vnez %v3380_v27  ;;  %v869_v11 = vpack.c.bf16 %v2802_v39, %v2800_v37 }
 0x21b   : > { %v773_v28 = vsel %vm3427_vm4, %v2045_v21, %v2065_v26  ;;  %v774_v31 = vsel %vm3428_vm3, %v2046_v19, %v2066_v36  ;;  %v775_v20 = vsel %vm3429_vm5, %v2065_v26, %v2045_v21  ;;  %vm3430_vm15 = vmmov %vm3428_vm3  ;;  %v2049_v32 = vpop.permute.xlu1 %2048  ;;  %vm3431_vm4 = vnez %v3378_v10 }
 0x21c   : > { %v776_v57 = vsel %vm3430_vm15, %v2066_v36, %v2046_v19  ;;  %1726 = vmatpush1.bf16.msk.msra.mxu1 %vm2621_vm1, %v1725_v17  ;;  %v1728_v33 = vpack.c.bf16 %v774_v31, %v773_v28  ;;  %v2051_v40 = vunpack.i.h.bf16 %v2049_v32  ;;  %v2050_v44 = vunpack.i.l.bf16 %v2049_v32  ;;  %v2069_v45 = vpop.permute.xlu0 %2068 }
 0x21d   : > { %v1731_v34 = vpack.c.bf16 %v776_v57, %v775_v20  ;;  %v2071_v46 = vunpack.i.h.bf16 %v2069_v45  ;;  %v2070_v47 = vunpack.i.l.bf16 %v2069_v45  ;;  %vm3432_vm3 = vcmp.lt.s32.totalorder %v2531_v13, 1 }
 0x21e   : > { %1729 = vmatprep.subr.msk.bf16.mxu1 %vm3431_vm4, %v1728_v33  ;;  %vm3433_vm5 = vmmov %vm3432_vm3 }
 0x21f   : > { %v789_v49 = vsel %vm3432_vm3, %v2050_v44, %v2070_v47  ;;  %v790_v50 = vsel %vm3433_vm5, %v2051_v40, %v2071_v46  ;;  %vm3434_vm15 = vmmov %vm3432_vm3  ;;  %v2074_v53 = vpop.permute.xlu1 %2073  ;;  %vm3438_vm5 = vcmp.lt.s32.totalorder %v2531_v13, 127 }
 0x220   : > { %v791_v51 = vsel %vm3434_vm15, %v2070_v47, %v2050_v44  ;;  %vm3435_vm1 = vmmov %vm3432_vm3  ;;  %1732 = vmatpush1.bf16.msk.msra.mxu1 %vm3436_vm13, %v1731_v34  ;;  %v1734_v54 = vpack.c.bf16 %v790_v50, %v789_v49  ;;  %v2076_v58 = vunpack.i.h.bf16 %v2074_v53  ;;  %v2075_v59 = vunpack.i.l.bf16 %v2074_v53  ;;  %v2094_v2 = vpop.permute.xlu0 %2093 }
 0x221   : > { %v792_v52 = vsel %vm3435_vm1, %v2071_v46, %v2051_v40  ;;  %v2096_v4 = vunpack.i.h.bf16 %v2094_v2  ;;  %v2095_v60 = vunpack.i.l.bf16 %v2094_v2  ;;  %vm3437_vm3 = vnez %v3382_v30  ;;  %vm3439_vm1 = vmmov %vm3438_vm5 }
 0x222   : > { %v1737_v55 = vpack.c.bf16 %v792_v52, %v791_v51  ;;  %1735 = vmatprep.subr.msk.bf16.mxu1 %vm3437_vm3, %v1734_v54  ;;  %vm3440_vm15 = vnez %v3384_v38  ;;  %vm3441_vm3 = vmmov %vm3439_vm1 }
 0x223   : > { %v807_v62 = vsel %vm3438_vm5, %v2095_v60, %v2075_v59  ;;  %v808_v63 = vsel %vm3439_vm1, %v2096_v4, %v2076_v58  ;;  %v2079_v0 = vpop.permute.xlu1 %2078  ;;  %v805_v24 = vsel %vm3441_vm3, %v2075_v59, %v2095_v60  ;;  %vm3442_vm5 = vmmov %vm3439_vm1  ;;  %vm3443_vm1 = vcmp.lt.s32.totalorder %v2531_v13, 113 }
 0x224   : > { %1738 = vmatpush1.bf16.msk.msra.mxu1 %vm3440_vm15, %v1737_v55  ;;  %v2081_v1 = vunpack.i.h.bf16 %v2079_v0  ;;  %v2080_v3 = vunpack.i.l.bf16 %v2079_v0  ;;  %v2099_v5 = vpop.permute.xlu0 %2098  ;;  %v806_v14 = vsel %vm3442_vm5, %v2076_v58, %v2096_v4  ;;  %v1740_v15 = vpack.c.bf16 %v808_v63, %v807_v62  ;;  %vm3444_vm15 = vmmov %vm3443_vm1  ;;  %v2275_v62 = vld [vmem:[%s3416_s3] ss:$8 sps:$4 sm:$0xff]   ;;  %s3494_s3 = smov 112  }
 0x225   : > { %913 = vmatprep.subr.bf16.mxu1 %v870_v23  ;;  %v2101_v8 = vunpack.i.h.bf16 %v2099_v5  ;;  %v2100_v9 = vunpack.i.l.bf16 %v2099_v5  ;;  %v1743_v28 = vpack.c.bf16 %v806_v14, %v805_v24  ;;  %vm3445_vm3 = vmmov %vm3443_vm1 }
 0x226   : > { %vm3446_vm5 = vmmov %vm3443_vm1 }
 0x227   : > { %v823_v17 = vsel %vm3443_vm1, %v2100_v9, %v2080_v3  ;;  %v824_v19 = vsel %vm3444_vm15, %v2101_v8, %v2081_v1  ;;  %v2084_v21 = vpop.permute.xlu1 %2083  ;;  %v821_v57 = vsel %vm3445_vm3, %v2080_v3, %v2100_v9  ;;  %v822_v32 = vsel %vm3446_vm5, %v2081_v1, %v2101_v8 }
 0x228   : > { %914 = vmatpush1.bf16.msra.mxu1 %v869_v11  ;;  %v2086_v25 = vunpack.i.h.bf16 %v2084_v21  ;;  %v2085_v36 = vunpack.i.l.bf16 %v2084_v21  ;;  %v2104_v26 = vpop.permute.xlu0 %2103  ;;  %v1746_v33 = vpack.c.bf16 %v824_v19, %v823_v17  ;;  %vm3447_vm15 = vcmp.lt.s32.totalorder %v2531_v13, 112 }
 0x229   : > { %1741 = vmatprep.subr.msk.bf16.mxu1 %vm2700_vm14, %v1740_v15  ;;  %v2106_v31 = vunpack.i.h.bf16 %v2104_v26  ;;  %v2105_v20 = vunpack.i.l.bf16 %v2104_v26  ;;  %vm3448_vm1 = vmmov %vm3447_vm15  ;;  %v1749_v49 = vpack.c.bf16 %v822_v32, %v821_v57  ;;  %v1101_v57 = vld [vmem:[%s3294_s6 + $0x8] sm:$0xff] }
 0x22a   : > { %vm3449_vm3 = vmmov %vm3448_vm1 }
 0x22b   : > { %v839_v34 = vsel %vm3447_vm15, %v2105_v20, %v2085_v36  ;;  %v840_v40 = vsel %vm3448_vm1, %v2106_v31, %v2086_v25  ;;  %v2089_v44 = vpop.permute.xlu1 %2088  ;;  %v837_v52 = vsel %vm3449_vm3, %v2085_v36, %v2105_v20  ;;  %vm3450_vm5 = vmmov %vm3448_vm1  ;;  %vm3451_vm15 = vcmp.lt.s32.totalorder %v2531_v13, 111  ;;  %v1100_v20 = vld [vmem:[%s3294_s6] sm:$0xff] }
 0x22c   : > { %1744 = vmatpush1.bf16.msk.msra.mxu1 %vm2716_vm7, %v1743_v28  ;;  %v2091_v45 = vunpack.i.h.bf16 %v2089_v44  ;;  %v2090_v46 = vunpack.i.l.bf16 %v2089_v44  ;;  %v2109_v47 = vpop.permute.xlu0 %2108  ;;  %v838_v53 = vsel %vm3450_vm5, %v2086_v25, %v2106_v31  ;;  %v1752_v54 = vpack.c.bf16 %v840_v40, %v839_v34  ;;  %vm3452_vm1 = vmmov %vm3451_vm15  ;;  %v2278_v31 = vld [vmem:[%s3293_s5 + $0x4] ss:$8 sps:$4 sm:$0xff]  }
 0x22d   : > { %1747 = vmatprep.subr.msk.bf16.mxu1 %vm2732_vm8, %v1746_v33  ;;  %v2111_v50 = vunpack.i.h.bf16 %v2109_v47  ;;  %v2110_v51 = vunpack.i.l.bf16 %v2109_v47  ;;  %v1755_v59 = vpack.c.bf16 %v838_v53, %v837_v52  ;;  %vm3453_vm8 = vmmov %vm3452_vm1  ;;  %vm3456_vm5 = vcmp.lt.s32.totalorder %v2531_v13, 17 }
 0x22e   : > { %vm3454_vm3 = vmmov %vm3452_vm1 }
 0x22f   : > { %v855_v55 = vsel %vm3451_vm15, %v2110_v51, %v2090_v46  ;;  %v856_v58 = vsel %vm3452_vm1, %v2111_v50, %v2091_v45  ;;  %v853_v2 = vsel %vm3453_vm8, %v2090_v46, %v2110_v51  ;;  %v854_v4 = vsel %vm3454_vm3, %v2091_v45, %v2111_v50  ;;  %vm3457_vm15 = vmmov %vm3456_vm5 }
 0x230   : > { %1750 = vmatpush1.bf16.msk.msra.mxu1 %vm2739_vm0, %v1749_v49  ;;  %v1758_v60 = vpack.c.bf16 %v856_v58, %v855_v55  ;;  %v1761_v23 = vpack.c.bf16 %v854_v4, %v853_v2  ;;  %vm3455_vm8 = vcmask 130048   ;;  %vm3458_vm1 = vmmov %vm3456_vm5 }
 0x231   : > { %1753 = vmatprep.subr.msk.bf16.mxu1 %vm2752_vm2, %v1752_v54  ;;  %1814 = vmatprep.mubr.msk.bf16.mxu0 %vm3455_vm8, %v2278_v31  ;;  %vm3459_vm3 = vmmov %vm3458_vm1  ;;  %vm3460_vm8 = vcmp.lt.s32.totalorder %v2531_v13, 16 }
 0x234   : > { %1756 = vmatpush1.bf16.msk.msra.mxu1 %vm2769_vm10, %v1755_v59 }
 0x235   : > { %1759 = vmatprep.subr.msk.bf16.mxu1 %vm2779_vm11, %v1758_v60 }
 0x238   : > { %1762 = vmatpush1.bf16.msk.msra.mxu1 %vm2791_vm6, %v1761_v23 }
 0x23b   : > { %938 = vmatmul.mubr.bf16.vlgmr.msra.gmra.mrb[0].mxu1 %v2275_v62 }
 0x23c   : > { %v886_v63 = vpop.permute.xlu1 %885 }
 0x23d   : > { %v891_v5 = vpop.permute.xlu0 %890 }
 0x30e   : > { %v939_v0 = vpop.f32.mrb[0].mxu1 }
 0x30f   : > { %v940_v1 = vadd.f32 %v939_v0, %v886_v63  ;;  %v941_v3 = vpop.f32.mrb[1].mxu1 }
 0x310   : > { %v942_v8 = vadd.f32 %v941_v3, %v886_v63  ;;  %v943_v9 = vpop.f32.mrb[2].mxu1 }
 0x311   : > { %v944_v11 = vadd.f32 %v943_v9, %v891_v5  ;;  %v945_v24 = vpop.f32.mrb[3].mxu1  ;;  %v948_v15 = vmax.f32 %v940_v1, 0.0 }
 0x312   : > { %v946_v14 = vadd.f32 %v945_v24, %v891_v5  ;;  %v949_v19 = vmax.f32 %v942_v8, 0.0 }
 0x313   : > { %v950_v17 = vmax.f32 %v944_v11, 0.0 }
 0x314   : > { %v951_v21 = vmax.f32 %v946_v14, 0.0 }
 0x315   : > { %v2112_v25 = vpack.i.bf16 %v950_v17, %v948_v15  ;;  %v2945_v28 = vpack.c.bf16 %v950_v17, %v948_v15 }
 0x316   : > { %v2132_v36 = vpack.i.bf16 %v951_v21, %v949_v19  ;;  %v2943_v26 = vpack.c.bf16 %v951_v21, %v949_v19 }
 0x317   : > { %2113 = vrot.lane.b32.xlu1 %v2112_v25, %s3410_s16 }
 0x318   : > { %2133 = vrot.lane.b32.xlu0 %v2132_v36, %s3410_s16 }
 0x31b   : > { %2118 = vrot.lane.b32.xlu1 %v2112_v25, %s3411_s20 }
 0x31c   : > { %2138 = vrot.lane.b32.xlu0 %v2132_v36, %s3411_s20 }
 0x31f   : > { %2123 = vrot.lane.b32.xlu1 %v2112_v25, %s3412_s21 }
 0x320   : > { %2143 = vrot.lane.b32.xlu0 %v2132_v36, %s3412_s21 }
 0x323   : > { %2128 = vrot.lane.b32.xlu1 %v2112_v25, %s3413_s22 }
 0x324   : > { %2148 = vrot.lane.b32.xlu0 %v2132_v36, %s3413_s22 }
 0x327   : > { %2153 = vrot.lane.b32.xlu1 %v2112_v25, %s3414_s30 }
 0x328   : > { %2173 = vrot.lane.b32.xlu0 %v2132_v36, %s3414_s30 }
 0x32b   : > { %2158 = vrot.lane.b32.xlu1 %v2112_v25, %s3415_s15 }
 0x32c   : > { %2178 = vrot.lane.b32.xlu0 %v2132_v36, %s3415_s15 }
 0x32f   : > { %2163 = vrot.lane.b32.xlu1 %v2112_v25, %s3345_s23 }
 0x330   : > { %2183 = vrot.lane.b32.xlu0 %v2132_v36, %s3345_s23 }
 0x333   : > { %2168 = vrot.lane.b32.xlu1 %v2112_v25, %s3417_s1 }
 0x334   : > { %2188 = vrot.lane.b32.xlu0 %v2132_v36, %s3417_s1 }
 0x337   : > { %1104 = vperm.xlu1 %2031, %v1100_v20  }
 0x338   : > { %1109 = vperm.xlu0 %2030, %v1101_v57  }
 0x389   : > { %v2114_v32 = vpop.permute.xlu1 %2113 }
 0x38a   : > { %v2116_v33 = vunpack.i.h.bf16 %v2114_v32  ;;  %v2115_v34 = vunpack.i.l.bf16 %v2114_v32  ;;  %v2134_v40 = vpop.permute.xlu0 %2133 }
 0x38b   : > { %v2136_v44 = vunpack.i.h.bf16 %v2134_v40  ;;  %v2135_v45 = vunpack.i.l.bf16 %v2134_v40 }
 0x38d   : > { %v960_v46 = vsel %vm3456_vm5, %v2115_v34, %v2135_v45  ;;  %v961_v47 = vsel %vm3457_vm15, %v2116_v33, %v2136_v44  ;;  %v962_v49 = vsel %vm3458_vm1, %v2135_v45, %v2115_v34  ;;  %v963_v50 = vsel %vm3459_vm3, %v2136_v44, %v2116_v33  ;;  %v2119_v51 = vpop.permute.xlu1 %2118  ;;  %vm3461_vm5 = vmmov %vm3460_vm8 }
 0x38e   : > { %v1767_v52 = vpack.c.bf16 %v961_v47, %v960_v46  ;;  %v1770_v53 = vpack.c.bf16 %v963_v50, %v962_v49  ;;  %v2121_v54 = vunpack.i.h.bf16 %v2119_v51  ;;  %v2120_v55 = vunpack.i.l.bf16 %v2119_v51  ;;  %v2139_v58 = vpop.permute.xlu0 %2138  ;;  %vm3462_vm15 = vmmov %vm3461_vm5 }
 0x38f   : > { %v2141_v59 = vunpack.i.h.bf16 %v2139_v58  ;;  %v2140_v2 = vunpack.i.l.bf16 %v2139_v58  ;;  %vm3463_vm1 = vmmov %vm3461_vm5  ;;  %vm3464_vm3 = vnez %v3370_v48 }
 0x390   : > { %1768 = vmatprep.subr.msk.bf16.mxu0 %vm2560_vm9, %v1767_v52 }
 0x391   : > { %v976_v4 = vsel %vm3460_vm8, %v2120_v55, %v2140_v2  ;;  %v977_v60 = vsel %vm3461_vm5, %v2121_v54, %v2141_v59  ;;  %v978_v23 = vsel %vm3462_vm15, %v2140_v2, %v2120_v55  ;;  %v979_v62 = vsel %vm3463_vm1, %v2141_v59, %v2121_v54  ;;  %v2124_v63 = vpop.permute.xlu1 %2123  ;;  %1771 = vmatpush1.bf16.msk.msra.mxu0 %vm2577_vm12, %v1770_v53 }
 0x392   : > { %v1773_v0 = vpack.c.bf16 %v977_v60, %v976_v4  ;;  %v1776_v1 = vpack.c.bf16 %v979_v62, %v978_v23  ;;  %v2126_v3 = vunpack.i.h.bf16 %v2124_v63  ;;  %v2125_v5 = vunpack.i.l.bf16 %v2124_v63  ;;  %v2144_v8 = vpop.permute.xlu0 %2143 }
 0x393   : > { %v2146_v9 = vunpack.i.h.bf16 %v2144_v8  ;;  %v2145_v11 = vunpack.i.l.bf16 %v2144_v8  ;;  %vm3465_vm8 = vcmp.lt.s32.totalorder %v2531_v13, 15  ;;  %vm3469_vm12 = vnez %v3376_v61 }
 0x394   : > { %1774 = vmatprep.subr.msk.bf16.mxu0 %vm3464_vm3, %v1773_v0  ;;  %vm3466_vm5 = vmmov %vm3465_vm8 }
 0x395   : > { %v992_v24 = vsel %vm3465_vm8, %v2125_v5, %v2145_v11  ;;  %v993_v14 = vsel %vm3466_vm5, %v2126_v3, %v2146_v9  ;;  %vm3467_vm15 = vmmov %vm3466_vm5  ;;  %v2129_v19 = vpop.permute.xlu1 %2128  ;;  %1777 = vmatpush1.bf16.msk.msra.mxu0 %vm3469_vm12, %v1776_v1  ;;  %vm3470_vm8 = vcmp.lt.s32.totalorder %v2531_v13, 1 }
 0x396   : > { %v994_v15 = vsel %vm3467_vm15, %v2145_v11, %v2125_v5  ;;  %vm3468_vm1 = vmmov %vm3466_vm5  ;;  %v1779_v21 = vpack.c.bf16 %v993_v14, %v992_v24  ;;  %v2131_v36 = vunpack.i.h.bf16 %v2129_v19  ;;  %v2130_v31 = vunpack.i.l.bf16 %v2129_v19  ;;  %v2149_v20 = vpop.permute.xlu0 %2148 }
 0x397   : > { %v995_v17 = vsel %vm3468_vm1, %v2146_v9, %v2126_v3  ;;  %v2151_v57 = vunpack.i.h.bf16 %v2149_v20  ;;  %v2150_v32 = vunpack.i.l.bf16 %v2149_v20  ;;  %vm3471_vm5 = vmmov %vm3470_vm8 }
 0x398   : > { %v1782_v25 = vpack.c.bf16 %v995_v17, %v994_v15  ;;  %1780 = vmatprep.subr.msk.bf16.mxu0 %vm3431_vm4, %v1779_v21  ;;  %vm3472_vm15 = vmmov %vm3471_vm5 }
 0x399   : > { %v1008_v33 = vsel %vm3470_vm8, %v2130_v31, %v2150_v32  ;;  %v1009_v34 = vsel %vm3471_vm5, %v2131_v36, %v2151_v57  ;;  %v1010_v40 = vsel %vm3472_vm15, %v2150_v32, %v2130_v31  ;;  %vm3473_vm1 = vmmov %vm3471_vm5  ;;  %v2154_v45 = vpop.permute.xlu1 %2153  ;;  %vm3474_vm8 = vnez %v3382_v30 }
 0x39a   : > { %v1011_v44 = vsel %vm3473_vm1, %v2151_v57, %v2131_v36  ;;  %1783 = vmatpush1.bf16.msk.msra.mxu0 %vm3436_vm13, %v1782_v25  ;;  %v1785_v46 = vpack.c.bf16 %v1009_v34, %v1008_v33  ;;  %v2156_v49 = vunpack.i.h.bf16 %v2154_v45  ;;  %v2155_v50 = vunpack.i.l.bf16 %v2154_v45  ;;  %v2174_v51 = vpop.permute.xlu0 %2173 }
 0x39b   : > { %v1788_v47 = vpack.c.bf16 %v1011_v44, %v1010_v40  ;;  %v2176_v52 = vunpack.i.h.bf16 %v2174_v51  ;;  %v2175_v53 = vunpack.i.l.bf16 %v2174_v51  ;;  %vm3475_vm5 = vcmp.lt.s32.totalorder %v2531_v13, 127 }
 0x39c   : > { %1786 = vmatprep.subr.msk.bf16.mxu0 %vm3474_vm8, %v1785_v46  ;;  %vm3476_vm15 = vmmov %vm3475_vm5  ;;  %vm3477_vm1 = vnez %v3384_v38 }
 0x39d   : > { %v1026_v54 = vsel %vm3475_vm5, %v2175_v53, %v2155_v50  ;;  %v1027_v55 = vsel %vm3476_vm15, %v2176_v52, %v2156_v49  ;;  %v2159_v58 = vpop.permute.xlu1 %2158  ;;  %vm3478_vm13 = vmmov %vm3475_vm5 }
 0x39e   : > { %1789 = vmatpush1.bf16.msk.msra.mxu0 %vm3477_vm1, %v1788_v47  ;;  %v2161_v59 = vunpack.i.h.bf16 %v2159_v58  ;;  %v2160_v2 = vunpack.i.l.bf16 %v2159_v58  ;;  %v2179_v4 = vpop.permute.xlu0 %2178  ;;  %v1024_v62 = vsel %vm3478_vm13, %v2155_v50, %v2175_v53  ;;  %vm3479_vm8 = vmmov %vm3475_vm5  ;;  %v1791_v0 = vpack.c.bf16 %v1027_v55, %v1026_v54  ;;  %v2280_v53 = vld [vmem:[%s3293_s5] ss:$8 sps:$4 sm:$0xff]  }
 0x39f   : > { %1132 = vmatprep.subr.bf16.mxu0 %v2943_v26  ;;  %v2181_v60 = vunpack.i.h.bf16 %v2179_v4  ;;  %v2180_v23 = vunpack.i.l.bf16 %v2179_v4  ;;  %v1025_v63 = vsel %vm3479_vm8, %v2156_v49, %v2176_v52  ;;  %vm3480_vm5 = vcmp.lt.s32.totalorder %v2531_v13, 113 }
 0x3a0   : > { %vm3481_vm15 = vmmov %vm3480_vm5  ;;  %v1794_v11 = vpack.c.bf16 %v1025_v63, %v1024_v62 }
 0x3a1   : > { %v1042_v1 = vsel %vm3480_vm5, %v2180_v23, %v2160_v2  ;;  %v1043_v3 = vsel %vm3481_vm15, %v2181_v60, %v2161_v59  ;;  %v2164_v5 = vpop.permute.xlu1 %2163  ;;  %vm3482_vm13 = vmmov %vm3480_vm5 }
 0x3a2   : > { %1133 = vmatpush1.bf16.msra.mxu0 %v2945_v28  ;;  %v2166_v8 = vunpack.i.h.bf16 %v2164_v5  ;;  %v2165_v26 = vunpack.i.l.bf16 %v2164_v5  ;;  %v2184_v9 = vpop.permute.xlu0 %2183  ;;  %v1040_v15 = vsel %vm3482_vm13, %v2160_v2, %v2180_v23  ;;  %vm3483_vm8 = vmmov %vm3480_vm5  ;;  %v1797_v19 = vpack.c.bf16 %v1043_v3, %v1042_v1 }
 0x3a3   : > { %1792 = vmatprep.subr.msk.bf16.mxu0 %vm2700_vm14, %v1791_v0  ;;  %v2186_v24 = vunpack.i.h.bf16 %v2184_v9  ;;  %v2185_v14 = vunpack.i.l.bf16 %v2184_v9  ;;  %v1041_v17 = vsel %vm3483_vm8, %v2161_v59, %v2181_v60  ;;  %vm3484_vm5 = vcmp.lt.s32.totalorder %v2531_v13, 112 }
 0x3a4   : > { %vm3485_vm15 = vmmov %vm3484_vm5  ;;  %vm3486_vm14 = vnez %v3393_v7  ;;  %v1800_v57 = vpack.c.bf16 %v1041_v17, %v1040_v15  ;;  %v2362_v3 = vmov 0.0|0.0   ;;  %v2364_v5 = vmov 0.0   ;;  %v1251_v15 = vld [vmem:[%s3297_s9] sm:$0xff] }
 0x3a5   : > { %v1058_v21 = vsel %vm3484_vm5, %v2185_v14, %v2165_v26  ;;  %v1059_v28 = vsel %vm3485_vm15, %v2186_v24, %v2166_v8  ;;  %v2169_v25 = vpop.permute.xlu1 %2168  ;;  %vm3487_vm13 = vmmov %vm3484_vm5  ;;  %v1176_v17 = vld [vmem:[%s3296_s8] sm:$0xf] }
 0x3a6   : > { %1795 = vmatpush1.bf16.msk.msra.mxu0 %vm2716_vm7, %v1794_v11  ;;  %v2171_v36 = vunpack.i.h.bf16 %v2169_v25  ;;  %v2170_v31 = vunpack.i.l.bf16 %v2169_v25  ;;  %v2189_v20 = vpop.permute.xlu0 %2188  ;;  %v1056_v34 = vsel %vm3487_vm13, %v2165_v26, %v2185_v14  ;;  %vm3488_vm8 = vmmov %vm3484_vm5  ;;  %v1803_v44 = vpack.c.bf16 %v1059_v28, %v1058_v21  ;;  %v1175_v14 = vld [vmem:[%s3295_s7] sm:$0xf] }
 0x3a7   : > { %1798 = vmatprep.subr.msk.bf16.mxu0 %vm3486_vm14, %v1797_v19  ;;  %v2191_v32 = vunpack.i.h.bf16 %v2189_v20  ;;  %v2190_v33 = vunpack.i.l.bf16 %v2189_v20  ;;  %v1057_v40 = vsel %vm3488_vm8, %v2166_v8, %v2186_v24  ;;  %vm3489_vm5 = vcmp.lt.s32.totalorder %v2531_v13, 111  ;;  %v1253_v20 = vld [vmem:[%s3298_s10] sm:$0xff] }
 0x3a8   : > { %vm3490_vm15 = vmmov %vm3489_vm5  ;;  %v1806_v47 = vpack.c.bf16 %v1057_v40, %v1056_v34  ;;  %vm3493_vm8 = vcmask 130048  }
 0x3a9   : > { %v1074_v45 = vsel %vm3489_vm5, %v2190_v33, %v2170_v31  ;;  %v1075_v46 = vsel %vm3490_vm15, %v2191_v32, %v2171_v36  ;;  %vm3491_vm14 = vmmov %vm3489_vm5  ;;  %vm1262_vm15 = vcmask 1043456  }
 0x3aa   : > { %1801 = vmatpush1.bf16.msk.msra.mxu0 %vm2739_vm0, %v1800_v57  ;;  %v1072_v49 = vsel %vm3491_vm14, %v2170_v31, %v2190_v33  ;;  %vm3492_vm13 = vmmov %vm3489_vm5  ;;  %v1809_v51 = vpack.c.bf16 %v1075_v46, %v1074_v45  ;;  %vm2363_vm14 = vmmov 0   ;;  %vm1255_vm5 = vcmask 31744   ;;  %v1254_v31 = vld [vmem:[%s3298_s10 + $0x8] sm:$0xff] }
 0x3ab   : > { %1804 = vmatprep.subr.msk.bf16.mxu0 %vm2752_vm2, %v1803_v44  ;;  %v1073_v50 = vsel %vm3492_vm13, %v2171_v36, %v2191_v32  ;;  %1893 = vmatprep.mubr.msk.f32.mxu1 %vm1255_vm5, %v1251_v15  ;;  %v1252_v36 = vld [vmem:[%s3297_s9 + $0x8] sm:$0xff]  ;;  %vm3495_vm13 = vmmov %vm3493_vm8 }
 0x3ac   : > { %v1812_v52 = vpack.c.bf16 %v1073_v50, %v1072_v49 }
 0x3ae   : > { %1807 = vmatpush1.bf16.msk.msra.mxu0 %vm2769_vm10, %v1806_v47 }
 0x3af   : > { %1810 = vmatprep.subr.msk.bf16.mxu0 %vm2779_vm11, %v1809_v51 }
 0x3b2   : > { %1813 = vmatpush1.bf16.msk.msra.mxu0 %vm2791_vm6, %v1812_v52 }
 0x3b3   : > { %1896 = vmatprep.subr.bf16.mxu0 %v2362_v3 }
 0x3b5   : > { %1157 = vmatmul.mubr.bf16.vlgmr.msra.gmra.mrb[4].mxu0 %v2280_v53 }
 0x3b6   : > { %v1105_v54 = vpop.permute.xlu1 %1104  ;;  %1888 = vmatprep.mubr.msk.f32.mxu0 %vm2363_vm14, %v2364_v5  ;;  %vm3496_vm14 = vcmp.lt.s32.totalorder %v2531_v13, 17 }
 0x3b7   : > { %v1110_v2 = vpop.permute.xlu0 %1109 }
 0x488   : > { %v1158_v55 = vpop.f32.mrb[4].mxu0 }
 0x489   : > { %v1159_v58 = vadd.f32 %v1158_v55, %v1105_v54  ;;  %v1160_v59 = vpop.f32.mrb[5].mxu0 }
 0x48a   : > { %v1161_v4 = vadd.f32 %v1160_v59, %v1105_v54  ;;  %v1162_v60 = vpop.f32.mrb[6].mxu0 }
 0x48b   : > { %v1163_v23 = vadd.f32 %v1162_v60, %v1110_v2  ;;  %v1164_v62 = vpop.f32.mrb[7].mxu0 }
 0x48c   : > { %v1165_v63 = vadd.f32 %v1164_v62, %v1110_v2  ;;  %v1167_v0 = vadd.f32 %v1161_v4, %v1159_v58  ;;  %v1516_v62 = vld [vmem:[%s3300_s12] sm:$0xf] }
 0x48e   : > { %1168 = vadd.xlane.f32.xlu1 %v1167_v0  ;;  %v1170_v1 = vadd.f32 %v1165_v63, %v1163_v23 }
 0x490   : > { %1171 = vadd.xlane.f32.xlu0 %v1170_v1 }
 0x51b   : > { %v1169_v8 = vpop.xlane.xlu1 %1168 }
 0x51c   : > { %v1173_v9 = vmul.f32 0.00390625, %v1169_v8 }
 0x51d   : > { %v1172_v26 = vpop.xlane.xlu0 %1171 }
 0x51e   : > { %v1174_v11 = vmul.f32 0.00390625, %v1172_v26 }
 0x520   : > { %v1897_v24 = vpack.c.bf16 %v1174_v11, %v1173_v9 }
 0x522   : > { %1898 = vmatpush3.bf16.msra.mxu0 %v1897_v24 }
 0x525   : > { %1889 = vmatmul.mubr.msk.f32.vlgmr.msra.gmra.mrb[8].mxu0 %vm3493_vm8, %v1175_v14  ;;  %vm3497_vm8 = vmmov %vm3496_vm14 }
 0x5f8   : > { %v1246_v19 = vpop.f32.mrb[8].mxu0 }
 0x5f9   : > { %v1247_v21 = vadd.f32 %v1246_v19, %v1176_v17  ;;  %v1890_v28 = vpop.f32.mrb[9].mxu0 }
 0x5fb   : > { %v1250_v25 = vmax.f32 %v1247_v21, 0.0 }
 0x5fd   : > { %1891 = vmatprep.subr.msk.mxu1 %vm1262_vm15, %v1250_v25 }
 0x5fe   : > { %1892 = vmatpush3.msk.msra.mxu1 %vm1262_vm15, %v1250_v25 }
 0x5ff   : > { %1894 = vmatmul.mubr.msk.f32.vlgmr.msra.gmra.mrb[4].mxu1 %vm1255_vm5, %v1252_v36  ;;  %vm3498_vm5 = vmmov %vm3497_vm8 }
 0x600   : > { %vm3499_vm15 = vmmov %vm3498_vm5 }
 0x6d2   : > { %v1895_v57 = vpop.f32.mrb[4].mxu1 }
 0x6d3   : > { %v1338_v32 = vadd.f32 %v1895_v57, %v1254_v31  ;;  %v1332_v33 = vpop.f32.mrb[5].mxu1 }
 0x6d4   : > { %v1333_v34 = vadd.f32 %v1332_v33, %v1253_v20 }
 0x6d5   : > { %v1820_v40 = vmul.f32 -1.442695, %v1338_v32 }
 0x6d6   : > { %v1819_v44 = vmul.f32 -1.442695, %v1333_v34 }
 0x6d7   : > { %2281 = vpow2.f32 %v1820_v40 }
 0x6d8   : > { %2283 = vpow2.f32 %v1819_v44 }
 0x6e1   : > { %v2282_v45 = vpop.eup %2281 }
 0x6e2   : > { %v2284_v46 = vpop.eup %2283  ;;  %v1348_v47 = vadd.f32 1.0, %v2282_v45 }
 0x6e3   : > { %v1347_v49 = vadd.f32 1.0, %v2284_v46 }
 0x6e4   : > { %2285 = vrcp.f32 %v1348_v47 }
 0x6e5   : > { %2287 = vrcp.f32 %v1347_v49 }
 0x6ee   : > { %v2286_v50 = vpop.eup %2285 }
 0x6ef   : > { %v2288_v51 = vpop.eup %2287  ;;  %v1354_v52 = vmul.f32 %v2286_v50, %v1174_v11 }
 0x6f0   : > { %v1353_v53 = vmul.f32 %v2288_v51, %v1173_v9 }
 0x6f1   : > { %1362 = vperm.xlu1 %2031, %v1354_v52  }
 0x6f2   : > { %1357 = vperm.xlu0 %2030, %v1353_v53  }
 0x770   : > { %v1363_v54 = vpop.permute.xlu1 %1362 }
 0x771   : > { %v3092_v55 = vadd.f32 %v1363_v54, %v2802_v39  ;;  %v3095_v58 = vadd.f32 %v1363_v54, %v2806_v43  ;;  %v1358_v59 = vpop.permute.xlu0 %1357 }
 0x772   : > { %v3098_v2 = vadd.f32 %v1358_v59, %v2800_v37  ;;  %v3101_v4 = vadd.f32 %v1358_v59, %v2804_v42  ;;  %v3128_v42 = vld.sshfl [vmem:[%s3299_s11] sm:$0x33 pattern:$0x76325410] }
 0x773   : > { %v1530_v43 = vcombine.high %v3128_v42, %v3128_v42 }
 0x774   : > { %v2197_v60 = vpack.i.bf16 %v3095_v58, %v3101_v4  ;;  %v2192_v23 = vpack.i.bf16 %v3092_v55, %v3098_v2  ;;  %v1506_v39 = vpack.c.bf16 %v3095_v58, %v3101_v4  ;;  %v1505_v37 = vpack.c.bf16 %v3092_v55, %v3098_v2 }
 0x775   : > { %1870 = vmatprep.mubr.msk.bf16.mxu1 %vm3495_vm13, %v1530_v43  ;;  %vm3500_vm13 = vcmp.lt.s32.totalorder %v2531_v13, 16 }
 0x776   : > { %2198 = vrot.lane.b32.xlu0 %v2197_v60, %s3410_s16  ;;  %2193 = vrot.lane.b32.xlu1 %v2192_v23, %s3410_s16 }
 0x77a   : > { %2208 = vrot.lane.b32.xlu0 %v2197_v60, %s3411_s20  ;;  %2203 = vrot.lane.b32.xlu1 %v2192_v23, %s3411_s20 }
 0x77e   : > { %2218 = vrot.lane.b32.xlu0 %v2197_v60, %s3412_s21  ;;  %2213 = vrot.lane.b32.xlu1 %v2192_v23, %s3412_s21 }
 0x782   : > { %2228 = vrot.lane.b32.xlu0 %v2197_v60, %s3413_s22  ;;  %2223 = vrot.lane.b32.xlu1 %v2192_v23, %s3413_s22 }
 0x786   : > { %2238 = vrot.lane.b32.xlu0 %v2197_v60, %s3414_s30  ;;  %2233 = vrot.lane.b32.xlu1 %v2192_v23, %s3414_s30  ;;  %s1877_s30 = sshll.u32 %s2457_s29, 7  ;;  %s2365_s29 = smov [#allocation3]  }
 0x787   : > { %s3246_s24 = scalar_lea.hbm %s3301_s13, %s1877_s30 }
 0x78a   : > { %2248 = vrot.lane.b32.xlu0 %v2197_v60, %s3415_s15  ;;  %2243 = vrot.lane.b32.xlu1 %v2192_v23, %s3415_s15 }
 0x78e   : > { %2258 = vrot.lane.b32.xlu0 %v2197_v60, %s3494_s3  ;;  %2253 = vrot.lane.b32.xlu1 %v2192_v23, %s3494_s3  ;;  %s2293_s3 = sshll.u32 %s2365_s29, 4  ;;  %s2294_s3 = int_to_ptr.vmem [resolvable:$false] %s2293_s3 }
 0x78f   : > { %s2295_s23 = scalar_lea.vmem %s2294_s3, 256 }
 0x792   : > { %2268 = vrot.lane.b32.xlu0 %v2197_v60, %s3417_s1  ;;  %2263 = vrot.lane.b32.xlu1 %v2192_v23, %s3417_s1  ;;  %s431_s1 = sand.u32 1, %s2343_s26  }
 0x793   : > { %s1659_s22 = sshll.u32 %s431_s1, 3  ;;  %s1582_s0 = scalar_lea.sflag [#allocation4], %s431_s1 }
 0x794   : > { %s433_s15 = scalar_lea.vmem [#allocation3], %s1659_s22 }
 0x795   : > { %s1596_s27 = sshll.u32 %s433_s15, 4  ;;  %s3248_s27 = int_to_ptr.vmem [resolvable:$true] %s1596_s27 }
 0x796   : > { %1519 = vperm.xlu1 %2031, %v1516_v62   ;;  %s2289_s2 = scalar_lea.vmem %s3248_s27, 128  ;;  %p2296_p0 = scmp.lt.s32.totalorder %s3248_s27, %s2294_s3 }
 0x797   : > { %p2290_p11 = scmp.ne.s32.totalorder %s3248_s27, %s2289_s2  ;;  %p2297_p1 = scmp.lt.s32.totalorder %s2295_s23, %s2289_s2 }
 0x799   : > { %p2291_p12 = pnand %p2290_p11, %p2474_p5  ;;  %p2298_p2 = por %p2297_p1, %p2296_p0 }
 0x79b   : > { %p2292_p13 = pneg %p2291_p12 }
 0x79d   : > { %p2299_p3 = pnand %p2298_p2, %p2292_p13 }
 0x7e8   : > { %v2199_v63 = vpop.permute.xlu0 %2198  ;;  %v2194_v0 = vpop.permute.xlu1 %2193 }
 0x7e9   : > { %v2201_v1 = vunpack.i.h.bf16 %v2199_v63  ;;  %v2200_v3 = vunpack.i.l.bf16 %v2199_v63  ;;  %v2196_v5 = vunpack.i.h.bf16 %v2194_v0  ;;  %v2195_v8 = vunpack.i.l.bf16 %v2194_v0 }
 0x7eb   : > { %v1378_v26 = vsel %vm3496_vm14, %v2196_v5, %v2201_v1  ;;  %v1380_v9 = vsel %vm3497_vm8, %v2201_v1, %v2196_v5  ;;  %v1377_v11 = vsel %vm3498_vm5, %v2195_v8, %v2200_v3  ;;  %v1379_v24 = vsel %vm3499_vm15, %v2200_v3, %v2195_v8  ;;  %vm3501_vm14 = vmmov %vm3500_vm13 }
 0x7ec   : > { %v1823_v14 = vpack.c.bf16 %v1378_v26, %v1377_v11  ;;  %v1826_v15 = vpack.c.bf16 %v1380_v9, %v1379_v24  ;;  %v2209_v17 = vpop.permute.xlu0 %2208  ;;  %v2204_v19 = vpop.permute.xlu1 %2203  ;;  %vm3502_vm8 = vmmov %vm3500_vm13  ;;  %vm3504_vm15 = vnez %v3368_v41 }
 0x7ed   : > { %v2211_v21 = vunpack.i.h.bf16 %v2209_v17  ;;  %v2210_v28 = vunpack.i.l.bf16 %v2209_v17  ;;  %v2206_v25 = vunpack.i.h.bf16 %v2204_v19  ;;  %v2205_v36 = vunpack.i.l.bf16 %v2204_v19  ;;  %vm3503_vm5 = vmmov %vm3502_vm8 }
 0x7ee   : > { %1824 = vmatprep.subr.msk.bf16.mxu1 %vm2560_vm9, %v1823_v14  ;;  %vm3505_vm9 = vcmp.lt.s32.totalorder %v2531_v13, 15 }
 0x7ef   : > { %v1394_v31 = vsel %vm3500_vm13, %v2206_v25, %v2211_v21  ;;  %v1396_v20 = vsel %vm3501_vm14, %v2211_v21, %v2206_v25  ;;  %v1393_v57 = vsel %vm3502_vm8, %v2205_v36, %v2210_v28  ;;  %v1395_v32 = vsel %vm3503_vm5, %v2210_v28, %v2205_v36  ;;  %1827 = vmatpush1.bf16.msk.msra.mxu1 %vm3504_vm15, %v1826_v15  ;;  %vm3506_vm13 = vmmov %vm3505_vm9 }
 0x7f0   : > { %v1829_v33 = vpack.c.bf16 %v1394_v31, %v1393_v57  ;;  %v1832_v34 = vpack.c.bf16 %v1396_v20, %v1395_v32  ;;  %v2219_v40 = vpop.permute.xlu0 %2218  ;;  %v2214_v35 = vpop.permute.xlu1 %2213  ;;  %vm3507_vm14 = vmmov %vm3505_vm9 }
 0x7f1   : > { %v2221_v44 = vunpack.i.h.bf16 %v2219_v40  ;;  %v2220_v45 = vunpack.i.l.bf16 %v2219_v40  ;;  %v2216_v46 = vunpack.i.h.bf16 %v2214_v35  ;;  %v2215_v47 = vunpack.i.l.bf16 %v2214_v35  ;;  %vm3508_vm8 = vmmov %vm3505_vm9 }
 0x7f2   : > { %1830 = vmatprep.subr.msk.bf16.mxu1 %vm3464_vm3, %v1829_v33  ;;  %vm3509_vm3 = vcmp.lt.s32.totalorder %v2531_v13, 1 }
 0x7f3   : > { %v1410_v49 = vsel %vm3505_vm9, %v2216_v46, %v2221_v44  ;;  %v1412_v50 = vsel %vm3506_vm13, %v2221_v44, %v2216_v46  ;;  %v1409_v41 = vsel %vm3507_vm14, %v2215_v47, %v2220_v45  ;;  %v1411_v51 = vsel %vm3508_vm8, %v2220_v45, %v2215_v47  ;;  %1833 = vmatpush1.bf16.msk.msra.mxu1 %vm3469_vm12, %v1832_v34  ;;  %vm3510_vm5 = vmmov %vm3509_vm3 }
 0x7f4   : > { %v1835_v52 = vpack.c.bf16 %v1410_v49, %v1409_v41  ;;  %v1838_v53 = vpack.c.bf16 %v1412_v50, %v1411_v51  ;;  %v2229_v54 = vpop.permute.xlu0 %2228  ;;  %v2224_v48 = vpop.permute.xlu1 %2223  ;;  %vm3511_vm15 = vmmov %vm3509_vm3  ;;  %vm3513_vm9 = vnez %v3380_v27  ;;  %vm3515_vm13 = vcmp.lt.s32.totalorder %v2531_v13, 127 }
 0x7f5   : > { %v2231_v59 = vunpack.i.h.bf16 %v2229_v54  ;;  %v2230_v60 = vunpack.i.l.bf16 %v2229_v54  ;;  %v2226_v23 = vunpack.i.h.bf16 %v2224_v48  ;;  %v2225_v43 = vunpack.i.l.bf16 %v2224_v48  ;;  %vm3512_vm12 = vmmov %vm3509_vm3 }
 0x7f6   : > { %1836 = vmatprep.subr.msk.bf16.mxu1 %vm3431_vm4, %v1835_v52  ;;  %vm3514_vm4 = vnez %v3382_v30  ;;  %vm3516_vm14 = vmmov %vm3515_vm13 }
 0x7f7   : > { %v1426_v62 = vsel %vm3509_vm3, %v2226_v23, %v2231_v59  ;;  %v1428_v63 = vsel %vm3510_vm5, %v2231_v59, %v2226_v23  ;;  %v1425_v61 = vsel %vm3511_vm15, %v2225_v43, %v2230_v60  ;;  %v1427_v0 = vsel %vm3512_vm12, %v2230_v60, %v2225_v43  ;;  %1839 = vmatpush1.bf16.msk.msra.mxu1 %vm3513_vm9, %v1838_v53  ;;  %vm3517_vm8 = vmmov %vm3515_vm13 }
 0x7f8   : > { %v1841_v1 = vpack.c.bf16 %v1426_v62, %v1425_v61  ;;  %v1844_v3 = vpack.c.bf16 %v1428_v63, %v1427_v0  ;;  %v2239_v5 = vpop.permute.xlu0 %2238  ;;  %v2234_v10 = vpop.permute.xlu1 %2233  ;;  %vm3518_vm3 = vmmov %vm3517_vm8  ;;  %vm3519_vm5 = vcmp.lt.s32.totalorder %v2531_v13, 113  ;;  %vm3523_vm9 = vnez %v3386_v56 }
 0x7f9   : > { %v2241_v8 = vunpack.i.h.bf16 %v2239_v5  ;;  %v2240_v26 = vunpack.i.l.bf16 %v2239_v5  ;;  %v2236_v9 = vunpack.i.h.bf16 %v2234_v10  ;;  %v2235_v11 = vunpack.i.l.bf16 %v2234_v10 }
 0x7fa   : > { %1842 = vmatprep.subr.msk.bf16.mxu1 %vm3514_vm4, %v1841_v1  ;;  %vm3524_vm4 = vcmp.lt.s32.totalorder %v2531_v13, 112 }
 0x7fb   : > { %v1444_v24 = vsel %vm3515_vm13, %v2241_v8, %v2236_v9  ;;  %v1443_v14 = vsel %vm3516_vm14, %v2240_v26, %v2235_v11  ;;  %1845 = vmatpush1.bf16.msk.msra.mxu1 %vm3477_vm1, %v1844_v3  ;;  %v1442_v27 = vsel %vm3517_vm8, %v2236_v9, %v2241_v8  ;;  %v1441_v15 = vsel %vm3518_vm3, %v2235_v11, %v2240_v26  ;;  %vm3520_vm1 = vmmov %vm3519_vm5 }
 0x7fc   : > { %v2249_v17 = vpop.permute.xlu0 %2248  ;;  %v2244_v19 = vpop.permute.xlu1 %2243  ;;  %1543 = vmatprep.subr.bf16.mxu1 %v1506_v39  ;;  %v1847_v36 = vpack.c.bf16 %v1444_v24, %v1443_v14  ;;  %v1850_v20 = vpack.c.bf16 %v1442_v27, %v1441_v15  ;;  %vm3521_vm15 = vmmov %vm3520_vm1  ;;  %vm3526_vm14 = vnez %v3393_v7 }
 0x7fd   : > { %v2251_v30 = vunpack.i.h.bf16 %v2249_v17  ;;  %v2250_v21 = vunpack.i.l.bf16 %v2249_v17  ;;  %v2246_v28 = vunpack.i.h.bf16 %v2244_v19  ;;  %v2245_v25 = vunpack.i.l.bf16 %v2244_v19  ;;  %vm3522_vm12 = vmmov %vm3520_vm1 }
 0x7fe   : > { %vm3525_vm13 = vmmov %vm3524_vm4 }
 0x7ff   : > { %v1460_v38 = vsel %vm3519_vm5, %v2251_v30, %v2246_v28  ;;  %v1459_v31 = vsel %vm3520_vm1, %v2250_v21, %v2245_v25  ;;  %1544 = vmatpush1.bf16.msra.mxu1 %v1505_v37  ;;  %v1458_v58 = vsel %vm3521_vm15, %v2246_v28, %v2251_v30  ;;  %v1457_v4 = vsel %vm3522_vm12, %v2245_v25, %v2250_v21  ;;  %vm3527_vm8 = vmmov %vm3524_vm4 }
 0x800   : > { %v2259_v39 = vpop.permute.xlu0 %2258  ;;  %v2254_v57 = vpop.permute.xlu1 %2253  ;;  %1848 = vmatprep.subr.msk.bf16.mxu1 %vm3523_vm9, %v1847_v36  ;;  %v1853_v35 = vpack.c.bf16 %v1460_v38, %v1459_v31  ;;  %v1856_v37 = vpack.c.bf16 %v1458_v58, %v1457_v4  ;;  %vm3528_vm3 = vmmov %vm3524_vm4 }
 0x801   : > { %v2261_v32 = vunpack.i.h.bf16 %v2259_v39  ;;  %v2260_v33 = vunpack.i.l.bf16 %v2259_v39  ;;  %v2256_v34 = vunpack.i.h.bf16 %v2254_v57  ;;  %v2255_v40 = vunpack.i.l.bf16 %v2254_v57 }
 0x803   : > { %v1476_v55 = vsel %vm3524_vm4, %v2261_v32, %v2256_v34  ;;  %v1475_v2 = vsel %vm3525_vm13, %v2260_v33, %v2255_v40  ;;  %1851 = vmatpush1.bf16.msk.msra.mxu1 %vm2716_vm7, %v1850_v20  ;;  %v1474_v50 = vsel %vm3527_vm8, %v2256_v34, %v2261_v32  ;;  %v1473_v41 = vsel %vm3528_vm3, %v2255_v40, %v2260_v33 }
 0x804   : > { %v2269_v44 = vpop.permute.xlu0 %2268  ;;  %v2264_v45 = vpop.permute.xlu1 %2263  ;;  %1854 = vmatprep.subr.msk.bf16.mxu1 %vm3526_vm14, %v1853_v35  ;;  %v1859_v51 = vpack.c.bf16 %v1476_v55, %v1475_v2  ;;  %vm3529_vm7 = vcmp.lt.s32.totalorder %v2531_v13, 111  ;;  %v1862_v7 = vpack.c.bf16 %v1474_v50, %v1473_v41 }
 0x805   : > { %v2271_v56 = vunpack.i.h.bf16 %v2269_v44  ;;  %v2270_v46 = vunpack.i.l.bf16 %v2269_v44  ;;  %v2266_v47 = vunpack.i.h.bf16 %v2264_v45  ;;  %v2265_v49 = vunpack.i.l.bf16 %v2264_v45  ;;  %vm3530_vm5 = vmmov %vm3529_vm7 }
 0x806   : > { %vm3531_vm1 = vmmov %vm3530_vm5 }
 0x807   : > { %v1492_v6 = vsel %vm3529_vm7, %v2271_v56, %v2266_v47  ;;  %v1491_v52 = vsel %vm3530_vm5, %v2270_v46, %v2265_v49  ;;  %1857 = vmatpush1.bf16.msk.msra.mxu1 %vm2739_vm0, %v1856_v37  ;;  %v1490_v53 = vsel %vm3531_vm1, %v2266_v47, %v2271_v56  ;;  %vm3532_vm15 = vmmov %vm3531_vm1 }
 0x808   : > { %1860 = vmatprep.subr.msk.bf16.mxu1 %vm2752_vm2, %v1859_v51  ;;  %v1489_v54 = vsel %vm3532_vm15, %v2265_v49, %v2270_v46  ;;  %v1865_v48 = vpack.c.bf16 %v1492_v6, %v1491_v52 }
 0x809   : > { %v1868_v12 = vpack.c.bf16 %v1490_v53, %v1489_v54 }
 0x80b   : > { %1863 = vmatpush1.bf16.msk.msra.mxu1 %vm2769_vm10, %v1862_v7 }
 0x80c   : > { %1866 = vmatprep.subr.msk.bf16.mxu1 %vm2779_vm11, %v1865_v48 }
 0x80f   : > { %1869 = vmatpush1.bf16.msk.msra.mxu1 %vm2791_vm6, %v1868_v12 }
 0x812   : > { %1568 = vmatmul.mubr.bf16.vlgmr.msra.gmra.mrb[8].mxu1 %v3128_v42 }
 0x815   : > { %v1520_v16 = vpop.permute.xlu1 %1519 }
 0x8e5   : > { %v1569_v59 = vpop.f32.mrb[8].mxu1 }
 0x8e6   : > { %v1570_v13 = vadd.f32 %v1569_v59, %v1520_v16  ;;  %v1571_v60 = vpop.f32.mrb[9].mxu1 }
 0x8e7   : > { %v1572_v22 = vadd.f32 %v1571_v60, %v1520_v16  ;;  %v1573_v23 = vpop.f32.mrb[10].mxu1 }
 0x8e8   : > { %v1574_v18 = vpop.f32.mrb[11].mxu1 }
 0x8e9   : > { %v1578_v43 = vcombine.low %v1570_v13, %v1572_v22 }
 0x8eb   : > { %1580 = vst [vmem:[%s433_s15] sm:$0xff] %v1578_v43 }
 0x8ec   : > { %2302 = shalt.err (!%p2299_p3)
}
 0x8ed   : > { %s2303_s16 = scalar_lea.hbm %s3246_s24, 128  ;;  %s2307_s1 = scalar_lea.hbm %s3301_s13, 256 }
 0x8ee   : > { %p2304_p4 = scmp.ne.s32.totalorder %s3246_s24, %s2303_s16  ;;  %p2308_p9 = scmp.lt.u32.totalorder %s3246_s24, %s3301_s13 }
 0x8ef   : > { %p2309_p10 = scmp.lt.u32.totalorder %s2307_s1, %s2303_s16  ;;  %p2311_p12 = scmp.lt.u32.totalorder %s2303_s16, %s3246_s24 }
 0x8f0   : > { %p2305_p7 = pnand %p2304_p4, %p2474_p5 }
 0x8f1   : > { %p2310_p11 = por %p2309_p10, %p2308_p9 }
 0x8f2   : > { %p2306_p8 = pneg %p2305_p7 }
 0x8f3   : > { %p2312_p13 = por %p2311_p12, %p2310_p11 }
 0x8f5   : > { %p2313_p0 = pnand %p2312_p13, %p2306_p8 }
 0x8f7   : > { %2316 = shalt.err (!%p2313_p0)
}
 0x8f8   : > { %1899 = dma.vmem_to_hbm [thread:$0]  (%p2474_p5), %s3248_s27, 128, %s3246_s24, %s1582_s0  }
 0x8f9 PF: > { %p1905_p1 = scmp.ge.s32.totalorder %s2351_s28, 2  ;;  %s1608_s15 = sand.u32 1, %s2339_s25  }
 0x8fa   : > { %s1609_s14 = scalar_lea.sflag [#allocation4], %s1608_s15 }
 0x8fb   : > { %p1902_p2 = pnand %p1905_p1, %p2478_p6 }
 0x8fd   : > { %2334 = dma.done.wait (!%p1902_p2), %s1609_s14, 128  }
 0x8fe   : > { %2336 = vsyncadd (!%p1902_p2), %s1609_s14, 4294967168  ;;  %s3533_s28 = sld [smem:[#allocation7_spill]]  ;;  %s3534_s17 = sld [smem:[#allocation6_spill]] }
 0x8ff   : > { %s3535_s27 = sld [smem:[#allocation8_spill]]  ;;  %s3536_s25 = smov %s2343_s26 }
 0x904   : > { %p23_p3 = scmp.ge.s32.totalorder %s3533_s28, 4   ;;  %s3537_s26 = smov %s3534_s17 }
 0x906   :  { %25 = sbr.rel (!%p23_p3) target bundleno = 8 (0x8), region = 107 }
 0x90d   :  { %1614 = vsyncpa [#allocation4], 1 }
 0x90e   :  { %1616 = vsyncpa [#allocation4 + $0x1], 1 }

</bundles_post_ra>
